<compile_context>
chip_gen: v5e
topology: v5e:2x2
jax: 0.10.0
libtpu: 0.0.40
codegen_flags: <defaults>
</compile_context>

<pallas_src>
import math

import jax
import jax.numpy as jnp
from jax.experimental import pallas as pl
from jax.experimental.pallas import tpu as pltpu

_TM = 512                     # row tile for linear / layernorm / ffn kernels
_TQ = 128                     # query tile for attention
_TK = 512                     # key tile for attention (flash streaming)
_NEG = -1e30                  # finite "blocked" logit (no NaN for fully masked rows)
_VMEM_LIMIT = 48 * 1024 * 1024


def _round_up(x, m):
    return (x + m - 1) // m * m


def _cparams(sem):
    return pltpu.CompilerParams(dimension_semantics=sem,
                                vmem_limit_bytes=_VMEM_LIMIT)


# ----------------------------------------------------------------------------
# Pallas kernels
# ----------------------------------------------------------------------------

def _linear_kernel(x_ref, w_ref, b_ref, o_ref):
    # y = x @ W^T + b (PyTorch nn.Linear, W: [out, in]); contraction on the last
    # dim of both operands feeds the MXU directly (no XLU transpose).
    x = x_ref[...].astype(jnp.float32)
    w = w_ref[...].astype(jnp.float32)
    y = jax.lax.dot_general(x, w, (((1,), (1,)), ((), ())),
                            preferred_element_type=jnp.float32)
    o_ref[...] = (y + b_ref[...].astype(jnp.float32)).astype(o_ref.dtype)


def linear(x, w, b):
    orig = x.shape
    K = orig[-1]
    N = w.shape[0]
    x2 = x.reshape(-1, K)
    M = x2.shape[0]
    tm = M if M <= _TM else _TM
    Mp = _round_up(M, tm)
    if Mp != M:
        x2 = jnp.pad(x2, ((0, Mp - M), (0, 0)))
    tn = N if (N <= 512 or N % 256 != 0) else 256
    out = pl.pallas_call(
        _linear_kernel,
        grid=(Mp // tm, N // tn),
        out_shape=jax.ShapeDtypeStruct((Mp, N), x.dtype),
        in_specs=[pl.BlockSpec((tm, K), lambda i, j: (i, 0)),
                  pl.BlockSpec((tn, K), lambda i, j: (j, 0)),
                  pl.BlockSpec((1, tn), lambda i, j: (0, j))],
        out_specs=pl.BlockSpec((tm, tn), lambda i, j: (i, j)),
        compiler_params=_cparams(("parallel", "parallel")),
    )(x2, w, b.reshape(1, N))
    if Mp != M:
        out = out[:M]
    return out.reshape(orig[:-1] + (N,))


def _ln(x, g, b):
    mu = jnp.mean(x, axis=-1, keepdims=True)
    xc = x - mu
    var = jnp.mean(xc * xc, axis=-1, keepdims=True)
    return xc * jax.lax.rsqrt(var + 1e-5) * g + b     # PyTorch LayerNorm eps=1e-5


def _ln_linear_kernel(x_ref, g_ref, b_ref, w_ref, wb_ref, o_ref):
    # linear(layer_norm(x)) fused: the normalized activations never hit HBM.
    x = x_ref[...].astype(jnp.float32)
    xn = _ln(x, g_ref[...].astype(jnp.float32), b_ref[...].astype(jnp.float32))
    y = jax.lax.dot_general(xn, w_ref[...].astype(jnp.float32),
                            (((1,), (1,)), ((), ())),
                            preferred_element_type=jnp.float32)
    o_ref[...] = (y + wb_ref[...].astype(jnp.float32)).astype(o_ref.dtype)


def _linear_add_ln_kernel(x_ref, r_ref, w_ref, b_ref, g_ref, bn_ref, o_ref):
    # layer_norm(residual + linear(x)) fused (attention out-proj + post-norm).
    x = x_ref[...].astype(jnp.float32)
    y = jax.lax.dot_general(x, w_ref[...].astype(jnp.float32),
                            (((1,), (1,)), ((), ())),
                            preferred_element_type=jnp.float32)
    y = y + b_ref[...].astype(jnp.float32) + r_ref[...].astype(jnp.float32)
    o_ref[...] = _ln(y, g_ref[...].astype(jnp.float32),
                     bn_ref[...].astype(jnp.float32)).astype(o_ref.dtype)


def _linear_scale_res_kernel(x_ref, r_ref, w_ref, b_ref, g_ref, o_ref):
    # residual + gamma * linear(x) fused (BiAttentionBlock output path).
    x = x_ref[...].astype(jnp.float32)
    y = jax.lax.dot_general(x, w_ref[...].astype(jnp.float32),
                            (((1,), (1,)), ((), ())),
                            preferred_element_type=jnp.float32)
    y = y + b_ref[...].astype(jnp.float32)
    o_ref[...] = (r_ref[...].astype(jnp.float32)
                  + g_ref[...].astype(jnp.float32) * y).astype(o_ref.dtype)


def _ffn_add_ln_kernel(x_ref, w1_ref, b1_ref, w2_ref, b2_ref, g_ref, bn_ref, o_ref):
    # layer_norm(x + linear2(relu(linear1(x)))) fused per row tile; keeps the
    # f32 ReLU intermediate tile-sized (fits v7x's 64 MiB VMEM at real shapes).
    x = x_ref[...].astype(jnp.float32)
    h = jax.lax.dot_general(x, w1_ref[...].astype(jnp.float32),
                            (((1,), (1,)), ((), ())),
                            preferred_element_type=jnp.float32)
    h = jnp.maximum(h + b1_ref[...].astype(jnp.float32), 0.0)
    y = jax.lax.dot_general(h, w2_ref[...].astype(jnp.float32),
                            (((1,), (1,)), ((), ())),
                            preferred_element_type=jnp.float32)
    y = y + b2_ref[...].astype(jnp.float32) + x
    o_ref[...] = _ln(y, g_ref[...].astype(jnp.float32),
                     bn_ref[...].astype(jnp.float32)).astype(o_ref.dtype)


def _row_tiled_call(kernel, row_inputs, bcast_inputs, d_out, dtype):
    # Tile all row_inputs (2-D, same #rows) over rows; broadcast bcast_inputs
    # (full-array blocks, constant index map -> DMA'd once, reused across tiles).
    M = row_inputs[0].shape[0]
    tm = M if M <= _TM else _TM
    Mp = _round_up(M, tm)
    if Mp != M:
        row_inputs = [jnp.pad(a, ((0, Mp - M), (0, 0))) for a in row_inputs]
    in_specs = ([pl.BlockSpec((tm, a.shape[1]), lambda i: (i, 0)) for a in row_inputs]
                + [pl.BlockSpec(a.shape, lambda i: (0, 0)) for a in bcast_inputs])
    out = pl.pallas_call(
        kernel,
        grid=(Mp // tm,),
        out_shape=jax.ShapeDtypeStruct((Mp, d_out), dtype),
        in_specs=in_specs,
        out_specs=pl.BlockSpec((tm, d_out), lambda i: (i, 0)),
        compiler_params=_cparams(("parallel",)),
    )(*row_inputs, *bcast_inputs)
    return out[:M] if Mp != M else out


def ln_linear(x, gamma, beta, w, b):
    orig = x.shape
    D = orig[-1]
    N = w.shape[0]
    out = _row_tiled_call(_ln_linear_kernel, [x.reshape(-1, D)],
                          [gamma.reshape(1, D), beta.reshape(1, D),
                           w, b.reshape(1, N)], N, x.dtype)
    return out.reshape(orig[:-1] + (N,))


def linear_add_ln(x, w, b, res, gamma, beta):
    orig = res.shape
    K = x.shape[-1]
    D = w.shape[0]
    out = _row_tiled_call(_linear_add_ln_kernel,
                          [x.reshape(-1, K), res.reshape(-1, D)],
                          [w, b.reshape(1, D),
                           gamma.reshape(1, D), beta.reshape(1, D)], D, res.dtype)
    return out.reshape(orig)


def linear_scale_residual(x, w, b, gamma, res):
    orig = res.shape
    K = x.shape[-1]
    D = w.shape[0]
    out = _row_tiled_call(_linear_scale_res_kernel,
                          [x.reshape(-1, K), res.reshape(-1, D)],
                          [w, b.reshape(1, D), gamma.reshape(1, D)], D, res.dtype)
    return out.reshape(orig)


def ffn_add_ln(x, w1, b1, w2, b2, gamma, beta):
    orig = x.shape
    D = orig[-1]
    F_ = w1.shape[0]
    out = _row_tiled_call(
        _ffn_add_ln_kernel, [x.reshape(-1, D)],
        [w1, b1.reshape(1, F_), w2, b2.reshape(1, D),
         gamma.reshape(1, D), beta.reshape(1, D)], D, x.dtype)
    return out.reshape(orig)


def _make_attn_kernel(per_head_mask, scale):
    def kernel(q_ref, k_ref, v_ref, m_ref, o_ref, q_sc, m_sc, l_sc, acc_sc):
        ki = pl.program_id(2)

        @pl.when(ki == 0)
        def _():
            # q*scale is invariant across the key stream -> compute once per
            # (batch, q-tile) and hold in VMEM scratch.
            q_sc[...] = q_ref[0].astype(jnp.float32) * scale
            m_sc[...] = jnp.full(m_sc.shape, _NEG, jnp.float32)
            l_sc[...] = jnp.zeros(l_sc.shape, jnp.float32)
            acc_sc[...] = jnp.zeros(acc_sc.shape, jnp.float32)

        q = q_sc[...]                                          # [H, tq, Dh]
        k = k_ref[0].astype(jnp.float32)                       # [H, tk, Dh]
        v = v_ref[0].astype(jnp.float32)                       # [H, tk, Dh]
        s = jax.lax.dot_general(q, k, (((2,), (2,)), ((0,), (0,))),
                                preferred_element_type=jnp.float32)   # [H, tq, tk]
        if per_head_mask:
            s = s + m_ref[0].astype(jnp.float32) * _NEG                # [H, tq, tk]
        else:
            s = s + (m_ref[0].astype(jnp.float32) * _NEG)[None, :, :]  # [1, 1, tk]

        m_prev = m_sc[...]
        m_new = jnp.maximum(m_prev, jnp.max(s, axis=-1, keepdims=True))
        alpha = jnp.exp(m_prev - m_new)
        p = jnp.exp(s - m_new)
        l_sc[...] = alpha * l_sc[...] + jnp.sum(p, axis=-1, keepdims=True)
        acc_sc[...] = alpha * acc_sc[...] + jax.lax.dot_general(
            p, v, (((2,), (1,)), ((0,), (0,))),
            preferred_element_type=jnp.float32)
        m_sc[...] = m_new

        @pl.when(ki == pl.num_programs(2) - 1)
        def _():
            inv_l = pl.reciprocal(jnp.maximum(l_sc[...], 1e-30), approx=True)
            o_ref[0] = (acc_sc[...] * inv_l).astype(o_ref.dtype)

    return kernel


def _attention(q, k, v, mask, *, scale, per_head_mask):
    """Flash-style masked MHA.

    q, k, v: [bs, H, L, Dh].  mask: [bs, H, Lq, Lk] boolean (per_head_mask=True)
    or a key padding mask [bs, Lk] (True/1 = blocked).  Streams key tiles with
    an online softmax; bias is built in-kernel (no dense [B*H,Lq,Lk] bias in HBM).
    Returns the head-merged output [bs, Lq, H*Dh].
    """
    bs, H, Lq, Dh = q.shape
    Lk = k.shape[2]
    tq = Lq if Lq <= _TQ else _TQ
    tk = Lk if Lk <= _TK else _TK
    Lqp, Lkp = _round_up(Lq, tq), _round_up(Lk, tk)
    if Lqp != Lq:
        q = jnp.pad(q, ((0, 0), (0, 0), (0, Lqp - Lq), (0, 0)))
    if Lkp != Lk:
        kv_pad = ((0, 0), (0, 0), (0, Lkp - Lk), (0, 0))
        k = jnp.pad(k, kv_pad)
        v = jnp.pad(v, kv_pad)
    if per_head_mask:
        mask = mask.astype(jnp.float32)
        if Lqp != Lq or Lkp != Lk:
            mask = jnp.pad(mask, ((0, 0), (0, 0), (0, Lqp - Lq), (0, Lkp - Lk)),
                           constant_values=1.0)        # padded keys are blocked
        m_spec = pl.BlockSpec((1, H, tq, tk), lambda b, qi, ki: (b, 0, qi, ki))
    else:
        mask = mask.astype(jnp.float32).reshape(bs, 1, Lk)
        if Lkp != Lk:
            mask = jnp.pad(mask, ((0, 0), (0, 0), (0, Lkp - Lk)),
                           constant_values=1.0)
        m_spec = pl.BlockSpec((1, 1, tk), lambda b, qi, ki: (b, 0, ki))

    out = pl.pallas_call(
        _make_attn_kernel(per_head_mask, scale),
        grid=(bs, Lqp // tq, Lkp // tk),
        out_shape=jax.ShapeDtypeStruct((bs, H, Lqp, Dh), q.dtype),
        in_specs=[pl.BlockSpec((1, H, tq, Dh), lambda b, qi, ki: (b, 0, qi, 0)),
                  pl.BlockSpec((1, H, tk, Dh), lambda b, qi, ki: (b, 0, ki, 0)),
                  pl.BlockSpec((1, H, tk, Dh), lambda b, qi, ki: (b, 0, ki, 0)),
                  m_spec],
        out_specs=pl.BlockSpec((1, H, tq, Dh), lambda b, qi, ki: (b, 0, qi, 0)),
        scratch_shapes=[pltpu.VMEM((H, tq, Dh), jnp.float32),   # q * scale
                        pltpu.VMEM((H, tq, 1), jnp.float32),    # running max
                        pltpu.VMEM((H, tq, 1), jnp.float32),    # running denom
                        pltpu.VMEM((H, tq, Dh), jnp.float32)],  # accumulator
        compiler_params=_cparams(("parallel", "parallel", "arbitrary")),
    )(q, k, v, mask)
    if Lqp != Lq:
        out = out[:, :, :Lq]
    # Head merge kept in XLA for lowering robustness (kernel writes one dense
    # (H, tq, Dh) block per (batch, q-tile), amortized over the key stream).
    return jnp.transpose(out, (0, 2, 1, 3)).reshape(bs, Lq, H * Dh)


def _split_heads(x, n_heads):
    bs, L, D = x.shape
    dh = D // n_heads
    return jnp.transpose(x.reshape(bs, L, n_heads, dh), (0, 2, 1, 3))


# ----------------------------------------------------------------------------
# Plain-JAX glue reproducing the reference module's helper math
# ----------------------------------------------------------------------------

def get_sine_pos_embed(pos_tensor, num_pos_feats=128, temperature=10000,
                       exchange_xy=True):
    scale = 2.0 * math.pi
    dim_t = jnp.arange(num_pos_feats, dtype=jnp.float32)
    dim_t = temperature ** (2.0 * jnp.floor(dim_t / 2.0) / num_pos_feats)

    def sine_func(x):                     # x: [bs, n, 1]
        sin_x = x * scale / dim_t         # [bs, n, num_pos_feats]
        out = jnp.stack([jnp.sin(sin_x[..., 0::2]), jnp.cos(sin_x[..., 1::2])],
                        axis=3)
        return out.reshape(sin_x.shape[0], sin_x.shape[1], -1)

    pos_res = [sine_func(pos_tensor[..., i:i + 1])
               for i in range(pos_tensor.shape[-1])]
    if exchange_xy:
        pos_res[0], pos_res[1] = pos_res[1], pos_res[0]
    return jnp.concatenate(pos_res, axis=-1)


def get_reference_points(spatial_shapes_list, valid_ratios):
    ref_list = []
    for lvl, (H, W) in enumerate(spatial_shapes_list):
        ref_y, ref_x = jnp.meshgrid(
            jnp.linspace(0.5, H - 0.5, H, dtype=jnp.float32),
            jnp.linspace(0.5, W - 0.5, W, dtype=jnp.float32),
            indexing="ij")
        ref_y = ref_y.reshape(-1)[None] / (valid_ratios[:, None, lvl, 1] * H)
        ref_x = ref_x.reshape(-1)[None] / (valid_ratios[:, None, lvl, 0] * W)
        ref_list.append(jnp.stack([ref_x, ref_y], axis=-1))
    reference_points = jnp.concatenate(ref_list, axis=1)          # [bs, sum, 2]
    return reference_points[:, :, None] * valid_ratios[:, None]   # [bs, sum, nlvl, 2]


def multi_scale_deformable_attn(value, spatial_shapes_list,
                                sampling_locations, attention_weights):
    # value: [bs, nv, nh, dh]; sampling_locations: [bs, nq, nh, nlvl, np, 2]
    # attention_weights: [bs, nq, nh, nlvl, np]
    # TODO(synk): F.grid_sample-equivalent bilinear gather is data-dependent; kept in plain JAX.
    bs, nv, nh, dh = value.shape
    _, nq, _, nlvl, npts, _ = sampling_locations.shape
    start = 0
    sampled_levels = []
    for lvl, (H, W) in enumerate(spatial_shapes_list):
        v_l = jax.lax.slice_in_dim(value, start, start + H * W, axis=1)
        start += H * W
        v_l = jnp.transpose(v_l, (0, 2, 1, 3))                    # [bs, nh, HW, dh]
        loc = jnp.transpose(sampling_locations[:, :, :, lvl], (0, 2, 1, 3, 4))
        # grid_sample(align_corners=False): pixel = loc * size - 0.5, zeros padding
        x = loc[..., 0] * W - 0.5
        y = loc[..., 1] * H - 0.5
        x0 = jnp.floor(x)
        y0 = jnp.floor(y)

        def gather(ix, iy):
            valid = (ix >= 0) & (ix <= W - 1) & (iy >= 0) & (iy <= H - 1)
            idx = (jnp.clip(iy, 0, H - 1) * W + jnp.clip(ix, 0, W - 1)).astype(jnp.int32)
            idx = idx.reshape(bs, nh, nq * npts)
            # row-gather without broadcasting indices over the channel dim
            g = jax.vmap(jax.vmap(lambda tbl, ii: jnp.take(tbl, ii, axis=0)))(v_l, idx)
            g = g.reshape(bs, nh, nq, npts, dh)
            return g * valid[..., None].astype(g.dtype)

        wx1 = x - x0
        wx0 = 1.0 - wx1
        wy1 = y - y0
        wy0 = 1.0 - wy1
        samp = (gather(x0, y0) * (wx0 * wy0)[..., None]
                + gather(x0 + 1, y0) * (wx1 * wy0)[..., None]
                + gather(x0, y0 + 1) * (wx0 * wy1)[..., None]
                + gather(x0 + 1, y0 + 1) * (wx1 * wy1)[..., None])
        sampled_levels.append(samp)                               # [bs, nh, nq, np, dh]
    sampled = jnp.stack(sampled_levels, axis=3)                    # [bs, nh, nq, nlvl, np, dh]
    w = jnp.transpose(attention_weights, (0, 2, 1, 3, 4))          # [bs, nh, nq, nlvl, np]
    out = jnp.sum(sampled * w[..., None], axis=(3, 4))             # [bs, nh, nq, dh]
    return jnp.transpose(out, (0, 2, 1, 3)).reshape(bs, nq, nh * dh)


# ----------------------------------------------------------------------------
# Layers
# ----------------------------------------------------------------------------

def ms_deform_attn(p, query, reference_points, value, spatial_shapes_list,
                   key_padding_mask, n_heads, n_levels, n_points):
    # Returns the pre-output_proj aggregation [bs, nq, d]; the caller fuses
    # output_proj with the residual add + layer norm.
    bs, nq, d = query.shape
    nv = value.shape[1]
    dh = d // n_heads
    v = linear(value, *p["value_proj"])
    v = jnp.where(key_padding_mask[..., None], 0.0, v)
    v = v.reshape(bs, nv, n_heads, dh)

    # Fused sampling_offsets + attention_weights projection: one MXU call.
    w_off, b_off = p["sampling_offsets"]
    w_aw, b_aw = p["attention_weights"]
    n_off = w_off.shape[0]
    proj = linear(query, jnp.concatenate([w_off, w_aw], axis=0),
                  jnp.concatenate([b_off, b_aw], axis=0))
    samp_off = proj[..., :n_off].reshape(bs, nq, n_heads, n_levels, n_points, 2)
    attn_w = proj[..., n_off:].reshape(bs, nq, n_heads, n_levels * n_points)
    attn_w = jax.nn.softmax(attn_w, axis=-1).reshape(
        bs, nq, n_heads, n_levels, n_points)

    offset_normalizer = jnp.array([(W, H) for (H, W) in spatial_shapes_list],
                                  dtype=jnp.float32)               # [nlvl, 2] = (W, H)
    sampling_locations = (reference_points[:, :, None, :, None, :]
                          + samp_off / offset_normalizer[None, None, None, :, None, :])
    return multi_scale_deformable_attn(v, spatial_shapes_list,
                                       sampling_locations, attn_w)


def deformable_encoder_layer(p, src, pos, reference_points, spatial_shapes_list,
                             key_padding_mask, n_heads, n_levels, n_points):
    attn_out = ms_deform_attn(p["self_attn"], src + pos, reference_points, src,
                              spatial_shapes_list, key_padding_mask,
                              n_heads, n_levels, n_points)
    # norm1(src + output_proj(attn_out)) fused in one kernel
    src = linear_add_ln(attn_out, *p["self_attn"]["output_proj"], src, *p["norm1"])
    src = ffn_add_ln(src, *p["linear1"], *p["linear2"], *p["norm2"])
    return src


def text_enhance_layer(p, src, blocked_mask, pos, nhead):
    # GroundingDINO transformer_vanilla.TransformerEncoderLayer (post-norm).
    bs, n, d = src.shape
    dh = d // nhead
    q_in = src + pos
    Wq, Wk, Wv = jnp.split(p["in_proj_w"], 3, axis=0)
    bq, bk, bv = jnp.split(p["in_proj_b"], 3, axis=0)
    # Fused q/k projection: one [2d, d] matmul instead of two [d, d] matmuls.
    qk = linear(q_in, jnp.concatenate([Wq, Wk], axis=0),
                jnp.concatenate([bq, bk], axis=0))
    q, k = qk[..., :d], qk[..., d:]
    v = linear(src, Wv, bv)
    qh = _split_heads(q, nhead)
    kh = _split_heads(k, nhead)
    vh = _split_heads(v, nhead)
    # Reproduce the GroundingDINO quirk: src_mask.repeat(nhead,1,1) is head-major
    # while torch's internal (bs*nhead) batching is batch-major, so the mask used
    # for flat index i = b*nhead + h is src_mask[i % bs].
    idx = (jnp.arange(bs)[:, None] * nhead + jnp.arange(nhead)[None, :]) % bs
    mask_bh = blocked_mask[idx].astype(jnp.float32)              # [bs, H, n, n]
    o = _attention(qh, kh, vh, mask_bh, scale=1.0 / math.sqrt(dh),
                   per_head_mask=True)
    # norm1(src + out_proj(o)) fused
    src = linear_add_ln(o, *p["out_proj"], src, *p["norm1"])
    src = ffn_add_ln(src, *p["linear1"], *p["linear2"], *p["norm2"])
    return src


def fusion_layer(p, v, l, attention_mask_v, attention_mask_l, num_heads):
    # BiAttentionBlock (+ BiMultiHeadAttention).
    # TODO(synk): the clamp(+-50000) of raw logits in the reference is omitted
    # (numerical no-op at fp32 scales); re-add if bit-level parity is required.
    bs, n_img, _ = v.shape
    n_text = l.shape[1]
    embed_dim = p["v_proj"][0].shape[0]
    dh = embed_dim // num_heads
    scale = dh ** -0.5

    # Fused layer_norm + (v_proj | values_v_proj) on v, and the same on l:
    # the normalized activations never round-trip through HBM.
    pv = ln_linear(v, *p["layer_norm_v"],
                   jnp.concatenate([p["v_proj"][0], p["values_v_proj"][0]], 0),
                   jnp.concatenate([p["v_proj"][1], p["values_v_proj"][1]], 0))
    q_img, val_v = pv[..., :embed_dim], pv[..., embed_dim:]
    pt = ln_linear(l, *p["layer_norm_l"],
                   jnp.concatenate([p["l_proj"][0], p["values_l_proj"][0]], 0),
                   jnp.concatenate([p["l_proj"][1], p["values_l_proj"][1]], 0))
    k_txt, val_l = pt[..., :embed_dim], pt[..., embed_dim:]

    qh = _split_heads(q_img, num_heads)
    kh = _split_heads(k_txt, num_heads)
    vvh = _split_heads(val_v, num_heads)
    vlh = _split_heads(val_l, num_heads)

    # Image queries -> text keys; the text -> image direction uses the transposed
    # logits, and the scalar 1/sqrt(dh) scale commutes, so it is applied to the
    # kernel's q input in both directions.
    out_v = _attention(qh, kh, vlh, attention_mask_l, scale=scale,
                       per_head_mask=False)                       # [bs, n_img, embed]
    out_l = _attention(kh, qh, vvh, attention_mask_v, scale=scale,
                       per_head_mask=False)                       # [bs, n_text, embed]

    # v + gamma_v * out_v_proj(out_v) fused (same for l)
    v = linear_scale_residual(out_v, *p["out_v_proj"], p["gamma_v"], v)
    l = linear_scale_residual(out_l, *p["out_l_proj"], p["gamma_l"], l)
    return v, l


# ----------------------------------------------------------------------------
# TransformerEncoder.forward
# ----------------------------------------------------------------------------

def transformer_encoder_forward(params, cfg, src, pos, spatial_shapes_list,
                                level_start_index, valid_ratios,
                                key_padding_mask, memory_text,
                                text_attention_mask, pos_text=None,
                                text_self_attention_masks=None,
                                position_ids=None):
    del level_start_index  # level splits derived from static spatial shapes
    output = src
    reference_points = get_reference_points(spatial_shapes_list, valid_ratios)

    bs, n_text, _ = memory_text.shape
    if pos_text is None and position_ids is None:
        pos_text = jnp.broadcast_to(
            jnp.arange(n_text, dtype=jnp.float32)[None, :, None], (bs, n_text, 1))
        pos_text = get_sine_pos_embed(pos_text, num_pos_feats=cfg["d_model"],
                                      exchange_xy=False)
    if position_ids is not None:
        pos_text = get_sine_pos_embed(position_ids[..., None].astype(jnp.float32),
                                      num_pos_feats=cfg["d_model"],
                                      exchange_xy=False)

    for layer_id in range(cfg["num_layers"]):
        output, memory_text = fusion_layer(
            params["fusion"][layer_id], output, memory_text,
            key_padding_mask, text_attention_mask, cfg["fusion_heads"])
        memory_text = text_enhance_layer(
            params["text"][layer_id], memory_text,
            jnp.logical_not(text_self_attention_masks), pos_text,
            cfg["text_nhead"])
        output = deformable_encoder_layer(
            params["layers"][layer_id], output, pos, reference_points,
            spatial_shapes_list, key_padding_mask,
            cfg["nhead"], cfg["n_levels"], cfg["n_points"])
    return output, memory_text


# ----------------------------------------------------------------------------
# Deterministic synthetic parameter init
# ----------------------------------------------------------------------------

def init_linear(key, out_dim, in_dim):
    kw, kb = jax.random.split(key)
    w = jax.random.normal(kw, (out_dim, in_dim), jnp.float32) * 0.02
    b = jax.random.normal(kb, (out_dim,), jnp.float32) * 0.01
    return (w, b)


def init_layernorm(dim):
    return (jnp.ones((dim,), jnp.float32), jnp.zeros((dim,), jnp.float32))


def init_params(key, cfg):
    keys = iter(jax.random.split(key, 256))
    nk = lambda: next(keys)
    d = cfg["d_model"]
    dff = cfg["dim_feedforward"]
    nh, nl, npts = cfg["nhead"], cfg["n_levels"], cfg["n_points"]
    params = {"layers": [], "text": [], "fusion": []}
    for _ in range(cfg["num_layers"]):
        params["layers"].append({
            "self_attn": {
                "sampling_offsets": init_linear(nk(), nh * nl * npts * 2, d),
                "attention_weights": init_linear(nk(), nh * nl * npts, d),
                "value_proj": init_linear(nk(), d, d),
                "output_proj": init_linear(nk(), d, d),
            },
            "norm1": init_layernorm(d),
            "linear1": init_linear(nk(), dff, d),
            "linear2": init_linear(nk(), d, dff),
            "norm2": init_layernorm(d),
        })
        t_ffn = dff // 2
        params["text"].append({
            "in_proj_w": jax.random.normal(nk(), (3 * d, d), jnp.float32) * 0.02,
            "in_proj_b": jnp.zeros((3 * d,), jnp.float32),
            "out_proj": init_linear(nk(), d, d),
            "norm1": init_layernorm(d),
            "linear1": init_linear(nk(), t_ffn, d),
            "linear2": init_linear(nk(), d, t_ffn),
            "norm2": init_layernorm(d),
        })
        embed_dim = dff // 2
        params["fusion"].append({
            "layer_norm_v": init_layernorm(d),
            "layer_norm_l": init_layernorm(d),
            "v_proj": init_linear(nk(), embed_dim, d),
            "l_proj": init_linear(nk(), embed_dim, d),
            "values_v_proj": init_linear(nk(), embed_dim, d),
            "values_l_proj": init_linear(nk(), embed_dim, d),
            "out_v_proj": init_linear(nk(), d, embed_dim),
            "out_l_proj": init_linear(nk(), d, embed_dim),
            "gamma_v": 1e-4 * jnp.ones((d,), jnp.float32),
            "gamma_l": 1e-4 * jnp.ones((d,), jnp.float32),
        })
    return params


# ----------------------------------------------------------------------------
# Example run
# ----------------------------------------------------------------------------

if __name__ == "__main__":
    cfg = dict(
        d_model=64,          # (scaled down from 256; sine pos feats follow d_model)
        nhead=4,
        dim_feedforward=128,
        num_layers=2,
        n_points=4,
        n_levels=2,
        text_nhead=2,        # nhead // 2, as in the GroundingDINO Transformer ctor
        fusion_heads=2,      # nhead // 2
    )
    spatial_shapes_list = [(8, 8), (4, 4)]
    bs = 2
    n_tokens = sum(h * w for h, w in spatial_shapes_list)   # 80
    n_text = 6

    key = jax.random.PRNGKey(0)
    k = iter(jax.random.split(key, 16))
    src = jax.random.normal(next(k), (bs, n_tokens, cfg["d_model"]), jnp.float32)
    pos = jax.random.normal(next(k), (bs, n_tokens, cfg["d_model"]), jnp.float32)
    memory_text = jax.random.normal(next(k), (bs, n_text, cfg["d_model"]), jnp.float32)

    level_start_index = jnp.array([0, spatial_shapes_list[0][0] * spatial_shapes_list[0][1]],
                                  jnp.int32)
    valid_ratios = jnp.ones((bs, cfg["n_levels"], 2), jnp.float32)
    key_padding_mask = jnp.zeros((bs, n_tokens), bool).at[1, -4:].set(True)
    text_attention_mask = jnp.zeros((bs, n_text), bool).at[1, -2:].set(True)
    text_self_attention_masks = jnp.ones((bs, n_text, n_text), bool)
    text_self_attention_masks = (text_self_attention_masks
                                 .at[1, :, -2:].set(False)
                                 .at[1, -2:, :].set(False)
                                 .at[1, -2, -2].set(True)
                                 .at[1, -1, -1].set(True))
    position_ids = jnp.broadcast_to(jnp.arange(n_text, dtype=jnp.int32), (bs, n_text))

    params = init_params(jax.random.PRNGKey(42), cfg)

    output, mem_text = transformer_encoder_forward(
        params, cfg, src, pos, spatial_shapes_list, level_start_index,
        valid_ratios, key_padding_mask, memory_text, text_attention_mask,
        pos_text=None, text_self_attention_masks=text_self_attention_masks,
        position_ids=position_ids)

    output, mem_text = jax.block_until_ready((output, mem_text))
    assert output.shape == (bs, n_tokens, cfg["d_model"])
    assert mem_text.shape == (bs, n_text, cfg["d_model"])
    assert bool(jnp.all(jnp.isfinite(output))) and bool(jnp.all(jnp.isfinite(mem_text)))
    print("KERNEL_OK")
</pallas_src>

<mosaic_0001>
module attributes {stable_mosaic.version = 11 : i64} {
  func.func @_ln_linear_kernel(%arg0: i32, %arg1: memref<160x64xf32, #tpu.memory_space<vmem>>, %arg2: memref<1x64xf32, #tpu.memory_space<vmem>>, %arg3: memref<1x64xf32, #tpu.memory_space<vmem>>, %arg4: memref<128x64xf32, #tpu.memory_space<vmem>>, %arg5: memref<1x128xf32, #tpu.memory_space<vmem>>, %arg6: memref<160x128xf32, #tpu.memory_space<vmem>>) attributes {dimension_semantics = [#tpu.dimension_semantics<parallel>], iteration_bounds = array<i64: 1>, scalar_prefetch = 0 : i64, scratch_operands = 0 : i64, tpu.core_type = #tpu.core_type<tc>, window_params = [{transform_indices = @transform_0, window_bounds = array<i64: 160, 64>}, {pipeline_mode = #tpu.pipeline_mode<synchronous>, transform_indices = @transform_1, window_bounds = array<i64: 1, 64>}, {pipeline_mode = #tpu.pipeline_mode<synchronous>, transform_indices = @transform_2, window_bounds = array<i64: 1, 64>}, {pipeline_mode = #tpu.pipeline_mode<synchronous>, transform_indices = @transform_3, window_bounds = array<i64: 128, 64>}, {pipeline_mode = #tpu.pipeline_mode<synchronous>, transform_indices = @transform_4, window_bounds = array<i64: 1, 128>}, {transform_indices = @transform_5, window_bounds = array<i64: 160, 128>}]} {
    %c0 = arith.constant 0 : index
    %c0_0 = arith.constant 0 : index
    %0 = vector.load %arg1[%c0, %c0_0] : memref<160x64xf32, #tpu.memory_space<vmem>>, vector<160x64xf32>
    %c0_1 = arith.constant 0 : index
    %c0_2 = arith.constant 0 : index
    %1 = vector.load %arg2[%c0_1, %c0_2] : memref<1x64xf32, #tpu.memory_space<vmem>>, vector<1x64xf32>
    %c0_3 = arith.constant 0 : index
    %c0_4 = arith.constant 0 : index
    %2 = vector.load %arg3[%c0_3, %c0_4] : memref<1x64xf32, #tpu.memory_space<vmem>>, vector<1x64xf32>
    %cst = arith.constant dense<0.000000e+00> : vector<160xf32>
    %3 = vector.multi_reduction <add>, %0, %cst [1] : vector<160x64xf32> to vector<160xf32>
    %4 = vector.shape_cast %3 : vector<160xf32> to vector<160x1xf32>
    %cst_5 = arith.constant 6.400000e+01 : f32
    %5 = vector.broadcast %cst_5 : f32 to vector<160x1xf32>
    %6 = arith.divf %4, %5 : vector<160x1xf32>
    %7 = vector.broadcast %6 : vector<160x1xf32> to vector<160x64xf32>
    %8 = arith.subf %0, %7 : vector<160x64xf32>
    %9 = arith.mulf %8, %8 : vector<160x64xf32>
    %cst_6 = arith.constant dense<0.000000e+00> : vector<160xf32>
    %10 = vector.multi_reduction <add>, %9, %cst_6 [1] : vector<160x64xf32> to vector<160xf32>
    %11 = vector.shape_cast %10 : vector<160xf32> to vector<160x1xf32>
    %cst_7 = arith.constant 6.400000e+01 : f32
    %12 = vector.broadcast %cst_7 : f32 to vector<160x1xf32>
    %13 = arith.divf %11, %12 : vector<160x1xf32>
    %cst_8 = arith.constant 9.99999974E-6 : f32
    %14 = vector.broadcast %cst_8 : f32 to vector<160x1xf32>
    %15 = arith.addf %13, %14 : vector<160x1xf32>
    %16 = math.rsqrt %15 : vector<160x1xf32>
    %17 = vector.broadcast %16 : vector<160x1xf32> to vector<160x64xf32>
    %18 = arith.mulf %8, %17 : vector<160x64xf32>
    %19 = vector.broadcast %1 : vector<1x64xf32> to vector<160x64xf32>
    %20 = arith.mulf %18, %19 : vector<160x64xf32>
    %21 = vector.broadcast %2 : vector<1x64xf32> to vector<160x64xf32>
    %22 = arith.addf %20, %21 : vector<160x64xf32>
    %c0_9 = arith.constant 0 : index
    %c0_10 = arith.constant 0 : index
    %23 = vector.load %arg4[%c0_9, %c0_10] : memref<128x64xf32, #tpu.memory_space<vmem>>, vector<128x64xf32>
    %cst_11 = arith.constant dense<0.000000e+00> : vector<160x128xf32>
    %24 = tpu.matmul %22, %23, %cst_11 {dimension_numbers = #tpu.dot_dimension_numbers<[1], [1], [0], [0], [0, 0, 1, 0], [], []>} : vector<160x64xf32>, vector<128x64xf32>, vector<160x128xf32> -> vector<160x128xf32>
    %c0_12 = arith.constant 0 : index
    %c0_13 = arith.constant 0 : index
    %25 = vector.load %arg5[%c0_12, %c0_13] : memref<1x128xf32, #tpu.memory_space<vmem>>, vector<1x128xf32>
    %26 = vector.broadcast %25 : vector<1x128xf32> to vector<160x128xf32>
    %27 = arith.addf %24, %26 : vector<160x128xf32>
    %c0_14 = arith.constant 0 : index
    %c0_15 = arith.constant 0 : index
    %28 = vector.load %arg6[%c0_14, %c0_15] : memref<160x128xf32, #tpu.memory_space<vmem>>, vector<160x128xf32>
    tpu.vector_store %arg6[%c0_14, %c0_15], %27 {strides = array<i32>} : memref<160x128xf32, #tpu.memory_space<vmem>>, vector<160x128xf32>,
    return
  }
  func.func @transform_0(%arg0: i32) -> (i32, i32) {
    %c0_i32 = arith.constant 0 : i32
    %c0_i32_0 = arith.constant 0 : i32
    return %arg0, %c0_i32 : i32, i32
  }
  func.func @transform_1(%arg0: i32) -> (i32, i32) {
    %c0_i32 = arith.constant 0 : i32
    %c0_i32_0 = arith.constant 0 : i32
    %c0_i32_1 = arith.constant 0 : i32
    return %c0_i32, %c0_i32_0 : i32, i32
  }
  func.func @transform_2(%arg0: i32) -> (i32, i32) {
    %c0_i32 = arith.constant 0 : i32
    %c0_i32_0 = arith.constant 0 : i32
    %c0_i32_1 = arith.constant 0 : i32
    return %c0_i32, %c0_i32_0 : i32, i32
  }
  func.func @transform_3(%arg0: i32) -> (i32, i32) {
    %c0_i32 = arith.constant 0 : i32
    %c0_i32_0 = arith.constant 0 : i32
    %c0_i32_1 = arith.constant 0 : i32
    return %c0_i32, %c0_i32_0 : i32, i32
  }
  func.func @transform_4(%arg0: i32) -> (i32, i32) {
    %c0_i32 = arith.constant 0 : i32
    %c0_i32_0 = arith.constant 0 : i32
    %c0_i32_1 = arith.constant 0 : i32
    return %c0_i32, %c0_i32_0 : i32, i32
  }
  func.func @transform_5(%arg0: i32) -> (i32, i32) {
    %c0_i32 = arith.constant 0 : i32
    %c0_i32_0 = arith.constant 0 : i32
    return %arg0, %c0_i32 : i32, i32
  }
}

</mosaic_0001>

<bundles_post_ra>
// kernel: tpu_custom_call.1
= control target key start
LH: loop header
LB: loop body
LE: loop exit
PB: predicated region body
PF: predicated region fallthrough
CT: control target
= control target key end

     0   :  { %vm43_vm0 = vcmask 523264   ;;  %s1882_s0 = inlined_call_operand.vmem [shape: f32[160,64], index: 0, kind: input, shape index: {}]   ;;  %s1883_s1 = inlined_call_operand.vmem [shape: f32[1,64], index: 1, kind: input, shape index: {}]   ;;  %s1884_s2 = inlined_call_operand.vmem [shape: f32[1,64], index: 2, kind: input, shape index: {}]   ;;  %s1885_s3 = inlined_call_operand.vmem [shape: f32[128,64], index: 3, kind: input, shape index: {}]   ;;  %s1886_s4 = inlined_call_operand.vmem [shape: f32[1,128], index: 4, kind: input, shape index: {}]   ;;  %s1887_s5 = inlined_call_operand.hbm [shape: f32[160,128], index: 5, kind: output, shape index: {}]  }
   0x1   :  { %v976_v0 = vld [vmem:[%s1882_s0 + $0x58] sm:$0xff]  ;;  %v981_v1 = vld [vmem:[%s1882_s0 + $0x50] sm:$0xff]  ;;  %v986_v2 = vld [vmem:[%s1882_s0] sm:$0xff] }
   0x2   :  { %v77_v3 = vsel %vm43_vm0, %v976_v0, 0.0  ;;  %v74_v4 = vsel %vm43_vm0, %v981_v1, 0.0  ;;  %v44_v5 = vsel %vm43_vm0, %v986_v2, 0.0  ;;  %v997_v6 = vld [vmem:[%s1882_s0 + $0x80] sm:$0xff]  ;;  %v1002_v7 = vld [vmem:[%s1882_s0 + $0x78] sm:$0xff]  ;;  %v1007_v8 = vld [vmem:[%s1882_s0 + $0x28] sm:$0xff] }
   0x3   :  { %78 = vadd.xlane.f32.xlu2 %v77_v3  ;;  %75 = vadd.xlane.f32.xlu0 %v74_v4 }
   0x4   :  { %45 = vadd.xlane.f32.xlu1 %v44_v5 }
   0x5   :  { %10 = vsyncpa [#allocation3], 0  ;;  %v92_v9 = vsel %vm43_vm0, %v997_v6, 0.0  ;;  %v89_v10 = vsel %vm43_vm0, %v1002_v7, 0.0  ;;  %v59_v11 = vsel %vm43_vm0, %v1007_v8, 0.0  ;;  %v1018_v12 = vld [vmem:[%s1882_s0 + $0x60] sm:$0xff] }
   0x6   :  { %v1023_v13 = vld [vmem:[%s1882_s0 + $0x8] sm:$0xff]  ;;  %v1028_v14 = vld [vmem:[%s1882_s0 + $0x30] sm:$0xff]  ;;  %v80_v15 = vsel %vm43_vm0, %v1018_v12, 0.0  ;;  %v1039_v18 = vld [vmem:[%s1882_s0 + $0x38] sm:$0xff]  ;;  %v939_v40 = vmov 64.0   ;;  %s768_s19 = sshll.u32 %s1887_s5, 4  ;;  %s769_s19 = int_to_ptr.hbm [resolvable:$true] %s768_s19 }
   0x7   :  { %v47_v16 = vsel %vm43_vm0, %v1023_v13, 0.0  ;;  %v62_v17 = vsel %vm43_vm0, %v1028_v14, 0.0  ;;  %v1044_v19 = vld [vmem:[%s1882_s0 + $0x88] sm:$0xff]  ;;  %v1049_v20 = vld [vmem:[%s1882_s0 + $0x10] sm:$0xff]  ;;  %v65_v21 = vsel %vm43_vm0, %v1039_v18, 0.0  ;;  %v1060_v24 = vld [vmem:[%s1882_s0 + $0x18] sm:$0xff]  ;;  %871 = vrcp.f32 %v939_v40 }
   0x8   :  { %v95_v22 = vsel %vm43_vm0, %v1044_v19, 0.0  ;;  %v50_v23 = vsel %vm43_vm0, %v1049_v20, 0.0  ;;  %v1065_v25 = vld [vmem:[%s1882_s0 + $0x68] sm:$0xff]  ;;  %v1070_v26 = vld [vmem:[%s1882_s0 + $0x90] sm:$0xff]  ;;  %v53_v27 = vsel %vm43_vm0, %v1060_v24, 0.0  ;;  %v1081_v30 = vld [vmem:[%s1882_s0 + $0x98] sm:$0xff] }
   0x9   :  { %v83_v28 = vsel %vm43_vm0, %v1065_v25, 0.0  ;;  %v98_v29 = vsel %vm43_vm0, %v1070_v26, 0.0  ;;  %v1086_v31 = vld [vmem:[%s1882_s0 + $0x40] sm:$0xff]  ;;  %v1091_v32 = vld [vmem:[%s1882_s0 + $0x70] sm:$0xff]  ;;  %v101_v33 = vsel %vm43_vm0, %v1081_v30, 0.0  ;;  %v1107_v37 = vld [vmem:[%s1882_s0 + $0x48] sm:$0xff] }
   0xa   :  { %v68_v34 = vsel %vm43_vm0, %v1086_v31, 0.0  ;;  %v86_v35 = vsel %vm43_vm0, %v1091_v32, 0.0  ;;  %v1102_v36 = vld [vmem:[%s1882_s0 + $0x20] sm:$0xff]  ;;  %v71_v39 = vsel %vm43_vm0, %v1107_v37, 0.0  ;;  %s941_s20 = smov 128   ;;  %s942_s21 = smov 8  }
   0xb   :  { %93 = vadd.xlane.f32.xlu2 %v92_v9  ;;  %90 = vadd.xlane.f32.xlu0 %v89_v10  ;;  %v56_v38 = vsel %vm43_vm0, %v1102_v36, 0.0 }
   0xc   :  { %60 = vadd.xlane.f32.xlu1 %v59_v11 }
   0xd   :  { %v872_v41 = vpop.eup %871 }
   0xe   :  { %v105_v42 = vmul.f32 64.0, %v872_v41  ;;  %vm109_vm1 = vweird.f32 %v872_v41 }
  0x10   :  { %v106_v43 = vsub.f32 1.0, %v105_v42 }
  0x12   :  { %v107_v44 = vmul.f32 %v872_v41, %v106_v43 }
  0x13   :  { %81 = vadd.xlane.f32.xlu2 %v80_v15  ;;  %48 = vadd.xlane.f32.xlu0 %v47_v16 }
  0x14   :  { %63 = vadd.xlane.f32.xlu1 %v62_v17  ;;  %v108_v45 = vadd.f32 %v872_v41, %v107_v44 }
  0x16   :  { %v1113_v46 = vsel %vm109_vm1, %v872_v41, %v108_v45 }
  0x1b   :  { %66 = vadd.xlane.f32.xlu2 %v65_v21  ;;  %96 = vadd.xlane.f32.xlu0 %v95_v22 }
  0x1c   :  { %51 = vadd.xlane.f32.xlu1 %v50_v23 }
  0x23   :  { %54 = vadd.xlane.f32.xlu2 %v53_v27  ;;  %84 = vadd.xlane.f32.xlu0 %v83_v28 }
  0x24   :  { %99 = vadd.xlane.f32.xlu1 %v98_v29 }
  0x2b   :  { %102 = vadd.xlane.f32.xlu2 %v101_v33  ;;  %69 = vadd.xlane.f32.xlu0 %v68_v34 }
  0x2c   :  { %87 = vadd.xlane.f32.xlu1 %v86_v35 }
  0x33   :  { %57 = vadd.xlane.f32.xlu0 %v56_v38 }
  0x34   :  { %72 = vadd.xlane.f32.xlu1 %v71_v39 }
  0x76   :  { %v79_v47 = vpop.xlane.xlu2 %78  ;;  %v76_v48 = vpop.xlane.xlu0 %75 }
  0x77   :  { %v121_v49 = vmul.f32 %v1113_v46, %v76_v48  ;;  %v46_v50 = vpop.xlane.xlu1 %45 }
  0x78   :  { %v111_v51 = vmul.f32 %v1113_v46, %v46_v50 }
  0x79   :  { %v1118_v52 = vsub.f32 %v981_v1, %v121_v49  ;;  %v122_v1 = vmul.f32 %v1113_v46, %v79_v47 }
  0x7a   :  { %v1121_v53 = vsub.f32 %v986_v2, %v111_v51 }
  0x7b   :  { %v161_v54 = vmul.f32 %v1118_v52, %v1118_v52  ;;  %v1149_v11 = vsub.f32 %v976_v0, %v122_v1 }
  0x7c   :  { %v151_v55 = vmul.f32 %v1121_v53, %v1121_v53 }
  0x7d   :  { %v201_v56 = vsel %vm43_vm0, %v161_v54, 0.0  ;;  %v162_v28 = vmul.f32 %v1149_v11, %v1149_v11 }
  0x7e   :  { %v94_v57 = vpop.xlane.xlu2 %93  ;;  %v91_v58 = vpop.xlane.xlu0 %90  ;;  %202 = vadd.xlane.f32.xlu2 %v201_v56  ;;  %v171_v59 = vsel %vm43_vm0, %v151_v55, 0.0 }
  0x7f   :  { %v127_v60 = vmul.f32 %v1113_v46, %v94_v57  ;;  %v126_v61 = vmul.f32 %v1113_v46, %v91_v58  ;;  %172 = vadd.xlane.f32.xlu1 %v171_v59  ;;  %v61_v62 = vpop.xlane.xlu1 %60  ;;  %v204_v35 = vsel %vm43_vm0, %v162_v28, 0.0 }
  0x80   :  { %v116_v63 = vmul.f32 %v1113_v46, %v61_v62  ;;  %v551_v62 = vld [vmem:[%s1885_s3 + $0x70] sm:$0xff] }
  0x81   :  { %v1134_v2 = vsub.f32 %v997_v6, %v127_v60  ;;  %v1137_v3 = vsub.f32 %v1002_v7, %v126_v61 }
  0x82   :  { %v1140_v4 = vsub.f32 %v1007_v8, %v116_v63 }
  0x83   :  { %v166_v5 = vmul.f32 %v1137_v3, %v1137_v3  ;;  %v167_v9 = vmul.f32 %v1134_v2, %v1134_v2 }
  0x84   :  { %v156_v10 = vmul.f32 %v1140_v4, %v1140_v4 }
  0x85   :  { %v216_v6 = vsel %vm43_vm0, %v166_v5, 0.0  ;;  %v219_v7 = vsel %vm43_vm0, %v167_v9, 0.0 }
  0x86   :  { %v82_v15 = vpop.xlane.xlu2 %81  ;;  %217 = vadd.xlane.f32.xlu0 %v216_v6  ;;  %v49_v8 = vpop.xlane.xlu0 %48  ;;  %v186_v16 = vsel %vm43_vm0, %v156_v10, 0.0  ;;  %v550_v10 = vld [vmem:[%s1885_s3 + $0x68] sm:$0xff] }
  0x87   :  { %v123_v17 = vmul.f32 %v1113_v46, %v82_v15  ;;  %v112_v21 = vmul.f32 %v1113_v46, %v49_v8  ;;  %220 = vadd.xlane.f32.xlu1 %v219_v7  ;;  %187 = vadd.xlane.f32.xlu2 %v186_v16  ;;  %v64_v22 = vpop.xlane.xlu1 %63 }
  0x88   :  { %v117_v23 = vmul.f32 %v1113_v46, %v64_v22 }
  0x89   :  { %v1158_v0 = vsub.f32 %v1018_v12, %v123_v17  ;;  %v1161_v27 = vsub.f32 %v1023_v13, %v112_v21 }
  0x8a   :  { %v1170_v34 = vsub.f32 %v1028_v14, %v117_v23  ;;  %v549_v23 = vld [vmem:[%s1885_s3 + $0x60] sm:$0xff] }
  0x8b   :  { %v163_v29 = vmul.f32 %v1158_v0, %v1158_v0  ;;  %v152_v33 = vmul.f32 %v1161_v27, %v1161_v27 }
  0x8c   :  { %v157_v42 = vmul.f32 %v1170_v34, %v1170_v34 }
  0x8d   :  { %v207_v12 = vsel %vm43_vm0, %v163_v29, 0.0  ;;  %v174_v38 = vsel %vm43_vm0, %v152_v33, 0.0 }
  0x8e   :  { %v67_v13 = vpop.xlane.xlu2 %66  ;;  %205 = vadd.xlane.f32.xlu0 %v204_v35  ;;  %v97_v39 = vpop.xlane.xlu0 %96  ;;  %v189_v49 = vsel %vm43_vm0, %v157_v42, 0.0  ;;  %v547_v42 = vld [vmem:[%s1885_s3 + $0x50] sm:$0xff] }
  0x8f   :  { %v118_v40 = vmul.f32 %v1113_v46, %v67_v13  ;;  %v128_v41 = vmul.f32 %v1113_v46, %v97_v39  ;;  %208 = vadd.xlane.f32.xlu1 %v207_v12  ;;  %175 = vadd.xlane.f32.xlu2 %v174_v38  ;;  %v52_v14 = vpop.xlane.xlu1 %51  ;;  %v548_v12 = vld [vmem:[%s1885_s3 + $0x58] sm:$0xff] }
  0x90   :  { %v113_v43 = vmul.f32 %v1113_v46, %v52_v14 }
  0x91   :  { %v1181_v44 = vsub.f32 %v1039_v18, %v118_v40  ;;  %v1184_v45 = vsub.f32 %v1044_v19, %v128_v41  ;;  %v552_v19 = vld [vmem:[%s1885_s3 + $0x78] sm:$0xff] }
  0x92   :  { %v1192_v50 = vsub.f32 %v1049_v20, %v113_v43  ;;  %780 = vmatpush.xpose.msk.msra.mxu0 %vm43_vm0, %v552_v19  ;;  %817 = vmatpush.xpose.msk.msra.mxu2 %vm43_vm0, %v552_v19 }
  0x93   :  { %v158_v47 = vmul.f32 %v1181_v44, %v1181_v44  ;;  %v168_v48 = vmul.f32 %v1184_v45, %v1184_v45  ;;  %816 = vmatpush.xpose.msk.msra.mxu1 %vm43_vm0, %v552_v19  ;;  %818 = vmatpush.xpose.msk.msra.mxu3 %vm43_vm0, %v552_v19  ;;  %v541_v19 = vld [vmem:[%s1885_s3 + $0x20] sm:$0xff] }
  0x94   :  { %v153_v20 = vmul.f32 %v1192_v50, %v1192_v50 }
  0x95   :  { %v192_v51 = vsel %vm43_vm0, %v158_v47, 0.0  ;;  %v222_v54 = vsel %vm43_vm0, %v168_v48, 0.0  ;;  %v546_v48 = vld [vmem:[%s1885_s3 + $0x48] sm:$0xff] }
  0x96   :  { %v55_v18 = vpop.xlane.xlu2 %54  ;;  %v85_v55 = vpop.xlane.xlu0 %84  ;;  %190 = vadd.xlane.f32.xlu0 %v189_v49  ;;  %781 = vmatpush.xpose.msk.msra.mxu0 %vm43_vm0, %v551_v62  ;;  %v545_v49 = vld [vmem:[%s1885_s3 + $0x40] sm:$0xff] }
  0x97   :  { %v114_v56 = vmul.f32 %v1113_v46, %v55_v18  ;;  %v124_v57 = vmul.f32 %v1113_v46, %v85_v55  ;;  %193 = vadd.xlane.f32.xlu1 %v192_v51  ;;  %223 = vadd.xlane.f32.xlu2 %v222_v54  ;;  %v100_v58 = vpop.xlane.xlu1 %99  ;;  %v544_v54 = vld [vmem:[%s1885_s3 + $0x38] sm:$0xff]  ;;  %v543_v18 = vld [vmem:[%s1885_s3 + $0x30] sm:$0xff]  ;;  %v542_v55 = vld [vmem:[%s1885_s3 + $0x28] sm:$0xff] }
  0x98   :  { %v129_v59 = vmul.f32 %v1113_v46, %v100_v58  ;;  %820 = vmatpush.xpose.msk.msra.mxu2 %vm43_vm0, %v551_v62  ;;  %819 = vmatpush.xpose.msk.msra.mxu1 %vm43_vm0, %v551_v62  ;;  %v537_v58 = vld [vmem:[%s1885_s3] sm:$0xff] }
  0x99   :  { %v1207_v60 = vsub.f32 %v1060_v24, %v114_v56  ;;  %v1210_v61 = vsub.f32 %v1065_v25, %v124_v57  ;;  %v177_v24 = vsel %vm43_vm0, %v153_v20, 0.0  ;;  %821 = vmatpush.xpose.msk.msra.mxu3 %vm43_vm0, %v551_v62  ;;  %v540_v56 = vld [vmem:[%s1885_s3 + $0x18] sm:$0xff]  ;;  %v539_v57 = vld [vmem:[%s1885_s3 + $0x10] sm:$0xff]  ;;  %v538_v20 = vld [vmem:[%s1885_s3 + $0x8] sm:$0xff] }
  0x9a   :  { %v1223_v5 = vsub.f32 %v1070_v26, %v129_v59  ;;  %782 = vmatpush.xpose.msk.msra.mxu0 %vm43_vm0, %v550_v10 }
  0x9b   :  { %v154_v63 = vmul.f32 %v1207_v60, %v1207_v60  ;;  %v164_v1 = vmul.f32 %v1210_v61, %v1210_v61 }
  0x9c   :  { %v169_v8 = vmul.f32 %v1223_v5, %v1223_v5  ;;  %823 = vmatpush.xpose.msk.msra.mxu2 %vm43_vm0, %v550_v10  ;;  %822 = vmatpush.xpose.msk.msra.mxu1 %vm43_vm0, %v550_v10 }
  0x9d   :  { %v180_v25 = vsel %vm43_vm0, %v154_v63, 0.0  ;;  %v210_v9 = vsel %vm43_vm0, %v164_v1, 0.0  ;;  %824 = vmatpush.xpose.msk.msra.mxu3 %vm43_vm0, %v550_v10 }
  0x9e   :  { %v103_v6 = vpop.xlane.xlu2 %102  ;;  %v70_v7 = vpop.xlane.xlu0 %69  ;;  %178 = vadd.xlane.f32.xlu0 %v177_v24  ;;  %783 = vmatpush.xpose.msk.msra.mxu0 %vm43_vm0, %v549_v23 }
  0x9f   :  { %v130_v26 = vmul.f32 %v1113_v46, %v103_v6  ;;  %v119_v15 = vmul.f32 %v1113_v46, %v70_v7  ;;  %181 = vadd.xlane.f32.xlu1 %v180_v25  ;;  %211 = vadd.xlane.f32.xlu2 %v210_v9  ;;  %v88_v16 = vpop.xlane.xlu1 %87 }
  0xa0   :  { %v125_v17 = vmul.f32 %v1113_v46, %v88_v16  ;;  %826 = vmatpush.xpose.msk.msra.mxu2 %vm43_vm0, %v549_v23  ;;  %825 = vmatpush.xpose.msk.msra.mxu1 %vm43_vm0, %v549_v23 }
  0xa1   :  { %v1242_v21 = vsub.f32 %v1081_v30, %v130_v26  ;;  %v1245_v22 = vsub.f32 %v1086_v31, %v119_v15  ;;  %v225_v30 = vsel %vm43_vm0, %v169_v8, 0.0  ;;  %827 = vmatpush.xpose.msk.msra.mxu3 %vm43_vm0, %v549_v23 }
  0xa2   :  { %v1258_v33 = vsub.f32 %v1091_v32, %v125_v17  ;;  %784 = vmatpush.xpose.msk.msra.mxu0 %vm43_vm0, %v548_v12 }
  0xa3   :  { %v170_v28 = vmul.f32 %v1242_v21, %v1242_v21  ;;  %v159_v29 = vmul.f32 %v1245_v22, %v1245_v22 }
  0xa4   :  { %v165_v13 = vmul.f32 %v1258_v33, %v1258_v33  ;;  %829 = vmatpush.xpose.msk.msra.mxu2 %vm43_vm0, %v548_v12  ;;  %828 = vmatpush.xpose.msk.msra.mxu1 %vm43_vm0, %v548_v12 }
  0xa5   :  { %v228_v31 = vsel %vm43_vm0, %v170_v28, 0.0  ;;  %v195_v35 = vsel %vm43_vm0, %v159_v29, 0.0  ;;  %830 = vmatpush.xpose.msk.msra.mxu3 %vm43_vm0, %v548_v12 }
  0xa6   :  { %v58_v38 = vpop.xlane.xlu0 %57  ;;  %226 = vadd.xlane.f32.xlu0 %v225_v30  ;;  %v213_v43 = vsel %vm43_vm0, %v165_v13, 0.0  ;;  %785 = vmatpush.xpose.msk.msra.mxu0 %vm43_vm0, %v547_v42 }
  0xa7   :  { %v115_v32 = vmul.f32 %v1113_v46, %v58_v38  ;;  %229 = vadd.xlane.f32.xlu1 %v228_v31  ;;  %196 = vadd.xlane.f32.xlu2 %v195_v35  ;;  %v73_v39 = vpop.xlane.xlu1 %72 }
  0xa8   :  { %v120_v40 = vmul.f32 %v1113_v46, %v73_v39  ;;  %832 = vmatpush.xpose.msk.msra.mxu2 %vm43_vm0, %v547_v42  ;;  %831 = vmatpush.xpose.msk.msra.mxu1 %vm43_vm0, %v547_v42 }
  0xa9   :  { %v1276_v41 = vsub.f32 %v1102_v36, %v115_v32  ;;  %833 = vmatpush.xpose.msk.msra.mxu3 %vm43_vm0, %v547_v42 }
  0xaa   :  { %v1287_v47 = vsub.f32 %v1107_v37, %v120_v40  ;;  %786 = vmatpush.xpose.msk.msra.mxu0 %vm43_vm0, %v546_v48 }
  0xab   :  { %v155_v14 = vmul.f32 %v1276_v41, %v1276_v41 }
  0xac   :  { %v160_v37 = vmul.f32 %v1287_v47, %v1287_v47  ;;  %835 = vmatpush.xpose.msk.msra.mxu2 %vm43_vm0, %v546_v48  ;;  %834 = vmatpush.xpose.msk.msra.mxu1 %vm43_vm0, %v546_v48 }
  0xad   :  { %v183_v36 = vsel %vm43_vm0, %v155_v14, 0.0  ;;  %836 = vmatpush.xpose.msk.msra.mxu3 %vm43_vm0, %v546_v48 }
  0xae   :  { %214 = vadd.xlane.f32.xlu0 %v213_v43  ;;  %v198_v51 = vsel %vm43_vm0, %v160_v37, 0.0  ;;  %787 = vmatpush.xpose.msk.msra.mxu0 %vm43_vm0, %v545_v49 }
  0xaf   :  { %184 = vadd.xlane.f32.xlu2 %v183_v36 }
  0xb0   :  { %838 = vmatpush.xpose.msk.msra.mxu2 %vm43_vm0, %v545_v49  ;;  %837 = vmatpush.xpose.msk.msra.mxu1 %vm43_vm0, %v545_v49 }
  0xb1   :  { %839 = vmatpush.xpose.msk.msra.mxu3 %vm43_vm0, %v545_v49 }
  0xb2   :  { %788 = vmatpush.xpose.msk.msra.mxu0 %vm43_vm0, %v544_v54 }
  0xb4   :  { %841 = vmatpush.xpose.msk.msra.mxu2 %vm43_vm0, %v544_v54  ;;  %840 = vmatpush.xpose.msk.msra.mxu1 %vm43_vm0, %v544_v54 }
  0xb5   :  { %842 = vmatpush.xpose.msk.msra.mxu3 %vm43_vm0, %v544_v54 }
  0xb6   :  { %199 = vadd.xlane.f32.xlu0 %v198_v51  ;;  %789 = vmatpush.xpose.msk.msra.mxu0 %vm43_vm0, %v543_v18 }
  0xb8   :  { %844 = vmatpush.xpose.msk.msra.mxu2 %vm43_vm0, %v543_v18  ;;  %843 = vmatpush.xpose.msk.msra.mxu1 %vm43_vm0, %v543_v18 }
  0xb9   :  { %845 = vmatpush.xpose.msk.msra.mxu3 %vm43_vm0, %v543_v18 }
  0xba   :  { %790 = vmatpush.xpose.msk.msra.mxu0 %vm43_vm0, %v542_v55 }
  0xbc   :  { %847 = vmatpush.xpose.msk.msra.mxu2 %vm43_vm0, %v542_v55  ;;  %846 = vmatpush.xpose.msk.msra.mxu1 %vm43_vm0, %v542_v55 }
  0xbd   :  { %848 = vmatpush.xpose.msk.msra.mxu3 %vm43_vm0, %v542_v55 }
  0xbe   :  { %791 = vmatpush.xpose.msk.msra.mxu0 %vm43_vm0, %v541_v19 }
  0xc0   :  { %850 = vmatpush.xpose.msk.msra.mxu2 %vm43_vm0, %v541_v19  ;;  %849 = vmatpush.xpose.msk.msra.mxu1 %vm43_vm0, %v541_v19 }
  0xc1   :  { %851 = vmatpush.xpose.msk.msra.mxu3 %vm43_vm0, %v541_v19 }
  0xc2   :  { %792 = vmatpush.xpose.msk.msra.mxu0 %vm43_vm0, %v540_v56 }
  0xc4   :  { %853 = vmatpush.xpose.msk.msra.mxu2 %vm43_vm0, %v540_v56  ;;  %852 = vmatpush.xpose.msk.msra.mxu1 %vm43_vm0, %v540_v56 }
  0xc5   :  { %854 = vmatpush.xpose.msk.msra.mxu3 %vm43_vm0, %v540_v56 }
  0xc6   :  { %793 = vmatpush.xpose.msk.msra.mxu0 %vm43_vm0, %v539_v57 }
  0xc8   :  { %856 = vmatpush.xpose.msk.msra.mxu2 %vm43_vm0, %v539_v57  ;;  %855 = vmatpush.xpose.msk.msra.mxu1 %vm43_vm0, %v539_v57 }
  0xc9   :  { %857 = vmatpush.xpose.msk.msra.mxu3 %vm43_vm0, %v539_v57 }
  0xca   :  { %794 = vmatpush.xpose.msk.msra.mxu0 %vm43_vm0, %v538_v20 }
  0xcc   :  { %859 = vmatpush.xpose.msk.msra.mxu2 %vm43_vm0, %v538_v20  ;;  %858 = vmatpush.xpose.msk.msra.mxu1 %vm43_vm0, %v538_v20 }
  0xcd   :  { %860 = vmatpush.xpose.msk.msra.mxu3 %vm43_vm0, %v538_v20 }
  0xce   :  { %795 = vmatpush.xpose.msk.msra.mxu0 %vm43_vm0, %v537_v58 }
  0xd0   :  { %862 = vmatpush.xpose.msk.msra.mxu2 %vm43_vm0, %v537_v58  ;;  %861 = vmatpush.xpose.msk.msra.mxu1 %vm43_vm0, %v537_v58 }
  0xd1   :  { %863 = vmatpush.xpose.msk.msra.mxu3 %vm43_vm0, %v537_v58 }
  0xf1   :  { %v203_v59 = vpop.xlane.xlu2 %202 }
  0xf2   :  { %v241_v62 = vmul.f32 %v203_v59, %v1113_v46  ;;  %v173_v63 = vpop.xlane.xlu1 %172 }
  0xf3   :  { %v231_v1 = vmul.f32 %v173_v63, %v1113_v46 }
  0xf4   :  { %v261_v24 = vadd.f32 1e-05, %v241_v62 }
  0xf5   :  { %v251_v25 = vadd.f32 1e-05, %v231_v1 }
  0xf6   :  { %873 = vrsqrt.f32 %v261_v24  ;;  %vm377_vm5 = vweird.f32 %v261_v24 }
  0xf7   :  { %875 = vrsqrt.f32 %v251_v25  ;;  %vm277_vm2 = vweird.f32 %v251_v25 }
  0xf9   :  { %v218_v9 = vpop.xlane.xlu0 %217 }
  0xfa   :  { %v246_v10 = vmul.f32 %v218_v9, %v1113_v46  ;;  %v188_v6 = vpop.xlane.xlu2 %187  ;;  %v221_v7 = vpop.xlane.xlu1 %220 }
  0xfb   :  { %v236_v26 = vmul.f32 %v188_v6, %v1113_v46  ;;  %v247_v15 = vmul.f32 %v221_v7, %v1113_v46 }
  0xfc   :  { %v1372_v8 = vpop.eup %873  ;;  %v1374_v16 = vadd.f32 1e-05, %v246_v10 }
  0xfd   :  { %v876_v17 = vpop.eup %875  ;;  %v372_v23 = vmul.f32 %v1372_v8, %v261_v24  ;;  %v1377_v28 = vadd.f32 1e-05, %v236_v26  ;;  %v1379_v29 = vadd.f32 1e-05, %v247_v15  ;;  %vm378_vm3 = vweird.f32 %v1372_v8 }
  0xfe   :  { %v272_v30 = vmul.f32 %v876_v17, %v251_v25  ;;  %877 = vrsqrt.f32 %v1374_v16  ;;  %vm278_vm4 = vweird.f32 %v876_v17  ;;  %vm1410_vm6 = vmor %vm377_vm5, %vm378_vm3  ;;  %vm427_vm8 = vweird.f32 %v1374_v16 }
  0xff   :  { %v373_v31 = vmul.f32 %v1372_v8, %v372_v23  ;;  %879 = vrsqrt.f32 %v1377_v28  ;;  %vm1421_vm7 = vmor %vm277_vm2, %vm278_vm4  ;;  %vm327_vm10 = vweird.f32 %v1377_v28  ;;  %vm437_vm11 = vweird.f32 %v1379_v29 }
 0x100   :  { %v273_v35 = vmul.f32 %v876_v17, %v272_v30  ;;  %881 = vrsqrt.f32 %v1379_v29 }
 0x101   :  { %v374_v12 = vmul.f32 0.5, %v373_v31  ;;  %v206_v38 = vpop.xlane.xlu0 %205 }
 0x102   :  { %v274_v32 = vmul.f32 0.5, %v273_v35  ;;  %v242_v13 = vmul.f32 %v206_v38, %v1113_v46  ;;  %v176_v39 = vpop.xlane.xlu2 %175  ;;  %v209_v40 = vpop.xlane.xlu1 %208 }
 0x103   :  { %v375_v42 = vsub.f32 1.5, %v374_v12  ;;  %v232_v14 = vmul.f32 %v176_v39, %v1113_v46  ;;  %v243_v54 = vmul.f32 %v209_v40, %v1113_v46 }
 0x104   :  { %v1387_v43 = vpop.eup %877  ;;  %v275_v36 = vsub.f32 1.5, %v274_v32  ;;  %v1389_v48 = vadd.f32 1e-05, %v242_v13  ;;  %v1447_v13 = vld [vmem:[%s1883_s1] ss:$0 sm:$0xff] }
 0x105   :  { %v1391_v37 = vpop.eup %879  ;;  %v422_v49 = vmul.f32 %v1387_v43, %v1374_v16  ;;  %v1395_v51 = vadd.f32 1e-05, %v232_v14  ;;  %v376_v55 = vmul.f32 %v1372_v8, %v375_v42  ;;  %v1415_v63 = vadd.f32 1e-05, %v243_v54 }
 0x106   :  { %v1398_v18 = vpop.eup %881  ;;  %v322_v19 = vmul.f32 %v1391_v37, %v1377_v28  ;;  %883 = vrsqrt.f32 %v1389_v48  ;;  %v276_v56 = vmul.f32 %v876_v17, %v275_v36  ;;  %vm428_vm9 = vweird.f32 %v1387_v43 }
 0x107   :  { %v423_v57 = vmul.f32 %v1387_v43, %v422_v49  ;;  %v432_v20 = vmul.f32 %v1398_v18, %v1379_v29  ;;  %885 = vrsqrt.f32 %v1395_v51  ;;  %v380_v9 = vsel %vm1410_vm6, %v1372_v8, %v376_v55  ;;  %vm1494_vm15 = vmor %vm427_vm8, %vm428_vm9 }
 0x108   :  { %v323_v58 = vmul.f32 %v1391_v37, %v322_v19  ;;  %v280_v26 = vsel %vm1421_vm7, %v876_v17, %v276_v56  ;;  %887 = vrsqrt.f32 %v1415_v63  ;;  %v481_v39 = vmul.f32 %v380_v9, %v1118_v52 }
 0x109   :  { %v433_v62 = vmul.f32 %v1398_v18, %v432_v20  ;;  %v191_v1 = vpop.xlane.xlu0 %190  ;;  %v424_v15 = vmul.f32 0.5, %v423_v57  ;;  %v471_v32 = vmul.f32 %v280_v26, %v1121_v53  ;;  %v1460_v53 = vld [vmem:[%s1884_s2] ss:$0 sm:$0xff]  ;;  %vm328_vm12 = vweird.f32 %v1391_v37 }
 0x10a   :  { %v224_v10 = vpop.xlane.xlu2 %223  ;;  %v237_v6 = vmul.f32 %v191_v1, %v1113_v46  ;;  %v194_v7 = vpop.xlane.xlu1 %193  ;;  %v324_v23 = vmul.f32 0.5, %v323_v58  ;;  %v504_v58 = vmul.f32 %v1447_v13, %v481_v39  ;;  %vm438_vm13 = vweird.f32 %v1398_v18  ;;  %vm1512_vm2 = vmor %vm327_vm10, %vm328_vm12 }
 0x10b   :  { %v248_v8 = vmul.f32 %v224_v10, %v1113_v46  ;;  %v434_v31 = vmul.f32 0.5, %v433_v62  ;;  %v238_v12 = vmul.f32 %v194_v7, %v1113_v46  ;;  %v425_v40 = vsub.f32 1.5, %v424_v15  ;;  %vm1532_vm6 = vmor %vm437_vm11, %vm438_vm13 }
 0x10c   :  { %v1429_v30 = vpop.eup %883  ;;  %v1432_v25 = vadd.f32 1e-05, %v237_v6  ;;  %v325_v42 = vsub.f32 1.5, %v324_v23  ;;  %v494_v20 = vmul.f32 %v1447_v13, %v471_v32  ;;  %v527_v7 = vadd.f32 %v1460_v53, %v504_v58 }
 0x10d   :  { %v382_v35 = vmul.f32 %v1429_v30, %v1389_v48  ;;  %v1438_v38 = vpop.eup %885  ;;  %v1440_v17 = vadd.f32 1e-05, %v248_v8  ;;  %v435_v49 = vsub.f32 1.5, %v434_v31  ;;  %v1465_v55 = vadd.f32 1e-05, %v238_v12 }
 0x10e   :  { %889 = vrsqrt.f32 %v1432_v25  ;;  %v282_v36 = vmul.f32 %v1438_v38, %v1395_v51  ;;  %v1462_v52 = vpop.eup %887  ;;  %v426_v62 = vmul.f32 %v1387_v43, %v425_v40  ;;  %v326_v1 = vmul.f32 %v1391_v37, %v325_v42  ;;  %806 = vmatmul.msk.f32.vlgmr.msra.gmra.mxu2 %vm43_vm0, %v527_v7 }
 0x10f   :  { %v383_v14 = vmul.f32 %v1429_v30, %v382_v35  ;;  %891 = vrsqrt.f32 %v1440_v17  ;;  %v392_v57 = vmul.f32 %v1462_v52, %v1415_v63  ;;  %v517_v6 = vadd.f32 %v1460_v53, %v494_v20 }
 0x110   :  { %v283_v56 = vmul.f32 %v1438_v38, %v282_v36  ;;  %893 = vrsqrt.f32 %v1465_v55  ;;  %v1483_v15 = vmul.f32 %v1398_v18, %v435_v49  ;;  %vm387_vm14 = vweird.f32 %v1389_v48 }
 0x111   :  { %v384_v54 = vmul.f32 0.5, %v383_v14  ;;  %v179_v19 = vpop.xlane.xlu0 %178  ;;  %v393_v10 = vmul.f32 %v1462_v52, %v392_v57  ;;  %vm287_vm1 = vweird.f32 %v1395_v51  ;;  %796 = vmatmul.msk.f32.vlgmr.msra.gmra.mxu0 %vm43_vm0, %v517_v6  ;;  %v430_v16 = vsel %vm1494_vm15, %v1387_v43, %v426_v62 }
 0x112   :  { %v212_v59 = vpop.xlane.xlu2 %211  ;;  %v182_v9 = vpop.xlane.xlu1 %181  ;;  %v284_v12 = vmul.f32 0.5, %v283_v56  ;;  %v233_v39 = vmul.f32 %v179_v19, %v1113_v46  ;;  %vm388_vm3 = vweird.f32 %v1429_v30  ;;  %v330_v49 = vsel %vm1512_vm2, %v1391_v37, %v326_v1 }
 0x113   :  { %v244_v26 = vmul.f32 %v212_v59, %v1113_v46  ;;  %v385_v23 = vsub.f32 1.5, %v384_v54  ;;  %v234_v40 = vmul.f32 %v182_v9, %v1113_v46  ;;  %v394_v14 = vmul.f32 0.5, %v393_v10  ;;  %vm1558_vm10 = vmor %vm387_vm14, %vm388_vm3 }
 0x114   :  { %v1476_v24 = vpop.eup %889  ;;  %vm288_vm4 = vweird.f32 %v1438_v38  ;;  %vm397_vm5 = vweird.f32 %v1415_v63  ;;  %v1540_v56 = vadd.f32 1e-05, %v233_v39  ;;  %v440_v20 = vsel %vm1532_vm6, %v1398_v18, %v1483_v15 }
 0x115   :  { %v332_v8 = vmul.f32 %v1476_v24, %v1432_v25  ;;  %v1488_v31 = vpop.eup %891  ;;  %v1501_v32 = vadd.f32 1e-05, %v244_v26  ;;  %v1537_v37 = vmul.f32 %v1429_v30, %v385_v23  ;;  %v1542_v57 = vadd.f32 1e-05, %v234_v40  ;;  %vm1597_vm14 = vmor %vm287_vm1, %vm288_vm4 }
 0x116   :  { %v442_v36 = vmul.f32 %v1488_v31, %v1440_v17  ;;  %v1526_v43 = vpop.eup %893  ;;  %v285_v58 = vsub.f32 1.5, %v284_v12  ;;  %v395_v9 = vsub.f32 1.5, %v394_v14  ;;  %vm398_vm7 = vweird.f32 %v1462_v52 }
 0x117   :  { %v333_v28 = vmul.f32 %v1476_v24, %v332_v8  ;;  %895 = vrsqrt.f32 %v1501_v32  ;;  %v342_v59 = vmul.f32 %v1526_v43, %v1465_v55  ;;  %vm447_vm8 = vweird.f32 %v1440_v17  ;;  %vm1618_vm1 = vmor %vm397_vm5, %vm398_vm7 }
 0x118   :  { %v443_v19 = vmul.f32 %v1488_v31, %v442_v36  ;;  %vm337_vm9 = vweird.f32 %v1432_v25  ;;  %897 = vrsqrt.f32 %v1540_v56  ;;  %vm338_vm11 = vweird.f32 %v1476_v24 }
 0x119   :  { %v334_v29 = vmul.f32 0.5, %v333_v28  ;;  %v227_v1 = vpop.xlane.xlu0 %226  ;;  %v343_v26 = vmul.f32 %v1526_v43, %v342_v59  ;;  %899 = vrsqrt.f32 %v1542_v57  ;;  %v390_v23 = vsel %vm1558_vm10, %v1429_v30, %v1537_v37  ;;  %vm1637_vm2 = vmor %vm337_vm9, %vm338_vm11 }
 0x11a   :  { %v197_v62 = vpop.xlane.xlu2 %196  ;;  %v444_v10 = vmul.f32 0.5, %v443_v19  ;;  %v476_v8 = vmul.f32 %v330_v49, %v1140_v4  ;;  %v486_v48 = vmul.f32 %v430_v16, %v1137_v3  ;;  %v230_v12 = vpop.xlane.xlu1 %229  ;;  %v286_v40 = vmul.f32 %v1438_v38, %v285_v58 }
 0x11b   :  { %v335_v7 = vsub.f32 1.5, %v334_v29  ;;  %v239_v35 = vmul.f32 %v197_v62, %v1113_v46  ;;  %vm448_vm12 = vweird.f32 %v1488_v31  ;;  %v344_v42 = vmul.f32 0.5, %v343_v26 }
 0x11c   :  { %vm347_vm13 = vweird.f32 %v1465_v55  ;;  %v249_v14 = vmul.f32 %v227_v1, %v1113_v46  ;;  %v1579_v30 = vmul.f32 %v1462_v52, %v395_v9  ;;  %v445_v4 = vsub.f32 1.5, %v444_v10  ;;  %vm1659_vm4 = vmor %vm447_vm8, %vm448_vm12 }
 0x11d   :  { %v1572_v39 = vpop.eup %895  ;;  %v499_v16 = vmul.f32 %v1447_v13, %v476_v8  ;;  %v1585_v36 = vmul.f32 %v1476_v24, %v335_v7  ;;  %v509_v49 = vmul.f32 %v1447_v13, %v486_v48  ;;  %v1588_v28 = vadd.f32 1e-05, %v239_v35 }
 0x11e   :  { %v402_v3 = vmul.f32 %v1572_v39, %v1501_v32  ;;  %v250_v37 = vmul.f32 %v230_v12, %v1113_v46  ;;  %v1591_v19 = vpop.eup %897  ;;  %v345_v29 = vsub.f32 1.5, %v344_v42  ;;  %v1603_v1 = vadd.f32 1e-05, %v249_v14 }
 0x11f   :  { %v522_v62 = vadd.f32 %v1460_v53, %v499_v16  ;;  %v1605_v9 = vpop.eup %899  ;;  %v290_v10 = vsel %vm1597_vm14, %v1438_v38, %v286_v40  ;;  %vm348_vm15 = vweird.f32 %v1526_v43  ;;  %v292_v51 = vmul.f32 %v1591_v19, %v1540_v56 }
 0x120   :  { %v403_v59 = vmul.f32 %v1572_v39, %v402_v3  ;;  %v532_v6 = vadd.f32 %v1460_v53, %v509_v49  ;;  %v1623_v26 = vmul.f32 %v1488_v31, %v445_v4  ;;  %v302_v38 = vmul.f32 %v1605_v9, %v1542_v57  ;;  %vm1688_vm6 = vmor %vm347_vm13, %vm348_vm15 }
 0x121   :  { %801 = vmatmul.msk.f32.vlgmr.msra.gmra.mxu1 %vm43_vm0, %v522_v62  ;;  %901 = vrsqrt.f32 %v1588_v28  ;;  %v400_v63 = vsel %vm1618_vm1, %v1462_v52, %v1579_v30  ;;  %v293_v35 = vmul.f32 %v1591_v19, %v292_v51  ;;  %vm297_vm3 = vweird.f32 %v1540_v56  ;;  %v215_v12 = vpop.xlane.xlu0 %214 }
 0x122   :  { %v404_v8 = vmul.f32 0.5, %v403_v59  ;;  %811 = vmatmul.msk.f32.vlgmr.msra.gmra.mxu3 %vm43_vm0, %v532_v6  ;;  %903 = vrsqrt.f32 %v1603_v1  ;;  %v340_v40 = vsel %vm1637_vm2, %v1476_v24, %v1585_v36  ;;  %v1650_v25 = vmul.f32 %v1526_v43, %v345_v29  ;;  %v185_v49 = vpop.xlane.xlu2 %184 }
 0x123   :  { %v303_v42 = vmul.f32 %v1605_v9, %v302_v38  ;;  %v1653_v14 = vadd.f32 1e-05, %v250_v37  ;;  %v294_v3 = vmul.f32 0.5, %v293_v35  ;;  %v472_v16 = vmul.f32 %v290_v10, %v1161_v27 }
 0x124   :  { %v482_v24 = vmul.f32 %v390_v23, %v1149_v11  ;;  %v487_v36 = vmul.f32 %v440_v20, %v1134_v2  ;;  %v450_v17 = vsel %vm1659_vm4, %v1488_v31, %v1623_v26  ;;  %v405_v37 = vsub.f32 1.5, %v404_v8 }
 0x125   :  { %vm407_vm5 = vweird.f32 %v1501_v32  ;;  %vm408_vm7 = vweird.f32 %v1572_v39  ;;  %v304_v27 = vmul.f32 0.5, %v303_v42  ;;  %905 = vrsqrt.f32 %v1653_v14 }
 0x126   :  { %v295_v11 = vsub.f32 1.5, %v294_v3  ;;  %vm307_vm8 = vweird.f32 %v1542_v57  ;;  %v495_v18 = vmul.f32 %v1447_v13, %v472_v16  ;;  %v505_v2 = vmul.f32 %v1447_v13, %v482_v24 }
 0x127   :  { %v510_v15 = vmul.f32 %v1447_v13, %v487_v36  ;;  %v1682_v54 = vpop.eup %901  ;;  %vm298_vm9 = vweird.f32 %v1591_v19  ;;  %vm308_vm10 = vweird.f32 %v1605_v9  ;;  %v235_v20 = vmul.f32 %v185_v49, %v1113_v46 }
 0x128   :  { %v245_v23 = vmul.f32 %v215_v12, %v1113_v46  ;;  %v1696_v58 = vpop.eup %903  ;;  %v350_v29 = vsel %vm1688_vm6, %v1526_v43, %v1650_v25  ;;  %v296_v55 = vmul.f32 %v1591_v19, %v295_v11  ;;  %v352_v59 = vmul.f32 %v1682_v54, %v1588_v28  ;;  %vm1725_vm13 = vmor %vm297_vm3, %vm298_vm9 }
 0x129   :  { %v518_v62 = vadd.f32 %v1460_v53, %v495_v18  ;;  %v305_v10 = vsub.f32 1.5, %v304_v27  ;;  %vm357_vm11 = vweird.f32 %v1588_v28  ;;  %v452_v51 = vmul.f32 %v1696_v58, %v1603_v1  ;;  %v200_v16 = vpop.xlane.xlu0 %199  ;;  %vm1761_vm3 = vmor %vm407_vm5, %vm408_vm7 }
 0x12a   :  { %v528_v6 = vadd.f32 %v1460_v53, %v505_v2  ;;  %v1711_v26 = vmul.f32 %v1572_v39, %v405_v37  ;;  %v353_v43 = vmul.f32 %v1682_v54, %v352_v59  ;;  %vm457_vm12 = vweird.f32 %v1603_v1  ;;  %vm1772_vm1 = vmor %vm307_vm8, %vm308_vm10 }
 0x12b   :  { %797 = vmatmul.msk.f32.gmra.mxu0 %vm43_vm0, %v518_v62  ;;  %v533_v8 = vadd.f32 %v1460_v53, %v510_v15  ;;  %v1717_v38 = vadd.f32 1e-05, %v235_v20  ;;  %v1719_v48 = vpop.eup %905  ;;  %vm358_vm14 = vweird.f32 %v1682_v54  ;;  %v453_v12 = vmul.f32 %v1696_v58, %v452_v51 }
 0x12c   :  { %807 = vmatmul.msk.f32.gmra.mxu2 %vm43_vm0, %v528_v6  ;;  %v1732_v25 = vadd.f32 1e-05, %v245_v23  ;;  %v477_v42 = vmul.f32 %v340_v40, %v1170_v34  ;;  %v300_v4 = vsel %vm1725_vm13, %v1591_v19, %v296_v55  ;;  %v354_v3 = vmul.f32 0.5, %v353_v43  ;;  %vm1789_vm4 = vmor %vm357_vm11, %vm358_vm14 }
 0x12d   :  { %v462_v56 = vmul.f32 %v1719_v48, %v1653_v14  ;;  %812 = vmatmul.msk.f32.gmra.mxu3 %vm43_vm0, %v533_v8  ;;  %907 = vrsqrt.f32 %v1717_v38  ;;  %v306_v24 = vmul.f32 %v1605_v9, %v305_v10  ;;  %v454_v36 = vmul.f32 0.5, %v453_v12 }
 0x12e   :  { %vm458_vm15 = vweird.f32 %v1696_v58  ;;  %vm467_vm2 = vweird.f32 %v1653_v14  ;;  %909 = vrsqrt.f32 %v1732_v25  ;;  %v355_v34 = vsub.f32 1.5, %v354_v3 }
 0x12f   :  { %v463_v19 = vmul.f32 %v1719_v48, %v462_v56  ;;  %v500_v40 = vmul.f32 %v1447_v13, %v477_v42  ;;  %v483_v49 = vmul.f32 %v400_v63, %v1158_v0  ;;  %v455_v37 = vsub.f32 1.5, %v454_v36  ;;  %vm1803_vm5 = vmor %vm457_vm12, %vm458_vm15 }
 0x130   :  { %v488_v27 = vmul.f32 %v450_v17, %v1184_v45  ;;  %v240_v11 = vmul.f32 %v200_v16, %v1113_v46  ;;  %v473_v18 = vmul.f32 %v300_v4, %v1192_v50  ;;  %v356_v7 = vmul.f32 %v1682_v54, %v355_v34 }
 0x131   :  { %v464_v15 = vmul.f32 0.5, %v463_v19  ;;  %v523_v0 = vadd.f32 %v1460_v53, %v500_v40  ;;  %v506_v52 = vmul.f32 %v1447_v13, %v483_v49  ;;  %v456_v45 = vmul.f32 %v1696_v58, %v455_v37 }
 0x132   :  { %v511_v50 = vmul.f32 %v1447_v13, %v488_v27  ;;  %v1778_v32 = vadd.f32 1e-05, %v240_v11  ;;  %v496_v30 = vmul.f32 %v1447_v13, %v473_v18  ;;  %v410_v17 = vsel %vm1761_vm3, %v1572_v39, %v1711_v26 }
 0x133   :  { %v908_v63 = vpop.eup %907  ;;  %v465_v31 = vsub.f32 1.5, %v464_v15  ;;  %802 = vmatmul.msk.f32.gmra.mxu1 %vm43_vm0, %v523_v0  ;;  %v529_v20 = vadd.f32 %v1460_v53, %v506_v52  ;;  %v478_v23 = vmul.f32 %v350_v29, %v1181_v44  ;;  %v310_v39 = vsel %vm1772_vm1, %v1605_v9, %v306_v24 }
 0x134   :  { %v910_v55 = vpop.eup %909  ;;  %vm468_vm7 = vweird.f32 %v1719_v48  ;;  %v312_v59 = vmul.f32 %v908_v63, %v1717_v38  ;;  %v534_v62 = vadd.f32 %v1460_v53, %v511_v50  ;;  %v360_v44 = vsel %vm1789_vm4, %v1682_v54, %v356_v7 }
 0x135   :  { %v460_v9 = vsel %vm1803_vm5, %v1696_v58, %v456_v45  ;;  %v412_v1 = vmul.f32 %v910_v55, %v1732_v25  ;;  %808 = vmatmul.msk.f32.gmra.mxu2 %vm43_vm0, %v529_v20  ;;  %911 = vrsqrt.f32 %v1778_v32  ;;  %v466_v29 = vmul.f32 %v1719_v48, %v465_v31  ;;  %vm1833_vm6 = vmor %vm467_vm2, %vm468_vm7 }
 0x136   :  { %v313_v10 = vmul.f32 %v908_v63, %v312_v59  ;;  %813 = vmatmul.msk.f32.gmra.mxu3 %vm43_vm0, %v534_v62  ;;  %v519_v51 = vadd.f32 %v1460_v53, %v496_v30  ;;  %v501_v6 = vmul.f32 %v1447_v13, %v478_v23  ;;  %v484_v26 = vmul.f32 %v410_v17, %v1210_v61 }
 0x137   :  { %v413_v54 = vmul.f32 %v910_v55, %v412_v1  ;;  %v474_v58 = vmul.f32 %v310_v39, %v1207_v60  ;;  %vm317_vm8 = vweird.f32 %v1717_v38  ;;  %v479_v8 = vmul.f32 %v360_v44, %v1245_v22 }
 0x138   :  { %v314_v43 = vmul.f32 0.5, %v313_v10  ;;  %798 = vmatmul.msk.f32.gmra.mxu0 %vm43_vm0, %v519_v51  ;;  %v489_v35 = vmul.f32 %v460_v9, %v1223_v5  ;;  %vm318_vm9 = vweird.f32 %v908_v63  ;;  %v524_v60 = vadd.f32 %v1460_v53, %v501_v6 }
 0x139   :  { %v414_v61 = vmul.f32 0.5, %v413_v54  ;;  %v507_v42 = vmul.f32 %v1447_v13, %v484_v26  ;;  %v470_v22 = vsel %vm1833_vm6, %v1719_v48, %v466_v29  ;;  %v497_v5 = vmul.f32 %v1447_v13, %v474_v58  ;;  %vm319_vm11 = vmor %vm317_vm8, %vm318_vm9 }
 0x13a   :  { %v315_v4 = vsub.f32 1.5, %v314_v43  ;;  %v512_v3 = vmul.f32 %v1447_v13, %v489_v35  ;;  %vm418_vm10 = vweird.f32 %v910_v55  ;;  %v502_v24 = vmul.f32 %v1447_v13, %v479_v8 }
 0x13b   :  { %v912_v14 = vpop.eup %911  ;;  %v415_v56 = vsub.f32 1.5, %v414_v61  ;;  %803 = vmatmul.msk.f32.gmra.mxu1 %vm43_vm0, %v524_v60  ;;  %v530_v16 = vadd.f32 %v1460_v53, %v507_v42  ;;  %vm417_vm12 = vweird.f32 %v1732_v25  ;;  %v490_v40 = vmul.f32 %v470_v22, %v1242_v21 }
 0x13c   :  { %v316_v36 = vmul.f32 %v908_v63, %v315_v4  ;;  %v362_v34 = vmul.f32 %v912_v14, %v1778_v32  ;;  %v535_v19 = vadd.f32 %v1460_v53, %v512_v3  ;;  %vm419_vm13 = vmor %vm417_vm12, %vm418_vm10  ;;  %v520_v27 = vadd.f32 %v1460_v53, %v497_v5 }
 0x13d   :  { %v416_v48 = vmul.f32 %v910_v55, %v415_v56  ;;  %809 = vmatmul.msk.f32.gmra.mxu2 %vm43_vm0, %v530_v16  ;;  %v525_v18 = vadd.f32 %v1460_v53, %v502_v24  ;;  %v513_v21 = vmul.f32 %v1447_v13, %v490_v40  ;;  %vm368_vm14 = vweird.f32 %v912_v14 }
 0x13e   :  { %v320_v49 = vsel %vm319_vm11, %v908_v63, %v316_v36  ;;  %v363_v37 = vmul.f32 %v912_v14, %v362_v34  ;;  %814 = vmatmul.msk.f32.gmra.mxu3 %vm43_vm0, %v535_v19  ;;  %vm367_vm15 = vweird.f32 %v1778_v32  ;;  %v870_v63 = vld [vmem:[%s1886_s4] ss:$0 sm:$0xff]  ;;  %s940_s4 = smov [#allocation2]  }
 0x13f   :  { %v420_v11 = vsel %vm419_vm13, %v910_v55, %v416_v48  ;;  %v475_v38 = vmul.f32 %v320_v49, %v1276_v41  ;;  %vm369_vm2 = vmor %vm367_vm15, %vm368_vm14  ;;  %s766_s16 = sshll.u32 %s940_s4, 4  ;;  %s767_s16 = int_to_ptr.vmem [resolvable:$true] %s766_s16 }
 0x140   :  { %v364_v2 = vmul.f32 0.5, %v363_v37  ;;  %799 = vmatmul.msk.f32.gmra.mxu0 %vm43_vm0, %v520_v27  ;;  %v485_v25 = vmul.f32 %v420_v11, %v1258_v33  ;;  %v536_v33 = vadd.f32 %v1460_v53, %v513_v21 }
 0x141   :  { %v498_v7 = vmul.f32 %v1447_v13, %v475_v38 }
 0x142   :  { %v365_v15 = vsub.f32 1.5, %v364_v2  ;;  %v508_v0 = vmul.f32 %v1447_v13, %v485_v25 }
 0x143   :  { %804 = vmatmul.msk.f32.gmra.mxu1 %vm43_vm0, %v525_v18  ;;  %v521_v41 = vadd.f32 %v1460_v53, %v498_v7 }
 0x144   :  { %v366_v52 = vmul.f32 %v912_v14, %v365_v15  ;;  %v531_v46 = vadd.f32 %v1460_v53, %v508_v0 }
 0x146   :  { %v370_v45 = vsel %vm369_vm2, %v912_v14, %v366_v52  ;;  %810 = vmatmul.msk.f32.gmra.mxu2 %vm43_vm0, %v531_v46  ;;  %815 = vmatmul.msk.f32.gmra.mxu3 %vm43_vm0, %v536_v33 }
 0x147   :  { %v480_v50 = vmul.f32 %v370_v45, %v1287_v47 }
 0x148   :  { %800 = vmatmul.msk.f32.gmra.mxu0 %vm43_vm0, %v521_v41 }
 0x149   :  { %v503_v30 = vmul.f32 %v1447_v13, %v480_v50 }
 0x14b   :  { %v526_v32 = vadd.f32 %v1460_v53, %v503_v30 }
 0x14d   :  { %805 = vmatmul.msk.f32.gmra.mxu1 %vm43_vm0, %v526_v32 }
 0x18e   :  { %v682_v17 = vpop.f32.mrf.mxu0 }
 0x18f   :  { %v683_v57 = vadd.f32 %v870_v63, %v682_v17 }
 0x191   :  { %742 = vst [vmem:[#allocation2] sm:$0xff] %v683_v57  ;;  %v712_v31 = vpop.f32.mrf.mxu2 }
 0x192   :  { %v713_v20 = vadd.f32 %v870_v63, %v712_v31 }
 0x194   :  { %752 = vst [vmem:[#allocation2 + $0x50] sm:$0xff] %v713_v20 }
 0x19e   :  { %v697_v23 = vpop.f32.mrf.mxu1 }
 0x19f   :  { %v698_v47 = vadd.f32 %v870_v63, %v697_v23 }
 0x1a1   :  { %747 = vst [vmem:[#allocation2 + $0x28] sm:$0xff] %v698_v47 }
 0x1a5   :  { %v727_v55 = vpop.f32.mrf.mxu3 }
 0x1a6   :  { %v728_v39 = vadd.f32 %v870_v63, %v727_v55 }
 0x1a8   :  { %v685_v13 = vpop.f32.mrf.mxu0  ;;  %757 = vst [vmem:[#allocation2 + $0x78] sm:$0xff] %v728_v39 }
 0x1a9   :  { %v686_v53 = vadd.f32 %v870_v63, %v685_v13 }
 0x1ab   :  { %743 = vst [vmem:[#allocation2 + $0x8] sm:$0xff] %v686_v53 }
 0x1af   :  { %v715_v28 = vpop.f32.mrf.mxu2 }
 0x1b0   :  { %v716_v59 = vadd.f32 %v870_v63, %v715_v28  ;;  %v730_v62 = vpop.f32.mrf.mxu3  ;;  %v700_v44 = vpop.f32.mrf.mxu1 }
 0x1b1   :  { %v731_v9 = vadd.f32 %v870_v63, %v730_v62  ;;  %v701_v1 = vadd.f32 %v870_v63, %v700_v44 }
 0x1b2   :  { %753 = vst [vmem:[#allocation2 + $0x58] sm:$0xff] %v716_v59 }
 0x1b3   :  { %758 = vst [vmem:[#allocation2 + $0x80] sm:$0xff] %v731_v9 }
 0x1b4   :  { %748 = vst [vmem:[#allocation2 + $0x30] sm:$0xff] %v701_v1 }
 0x1b5   :  { %v688_v29 = vpop.f32.mrf.mxu0 }
 0x1b6   :  { %v689_v10 = vadd.f32 %v870_v63, %v688_v29 }
 0x1b8   :  { %v718_v51 = vpop.f32.mrf.mxu2  ;;  %744 = vst [vmem:[#allocation2 + $0x10] sm:$0xff] %v689_v10  ;;  %v703_v6 = vpop.f32.mrf.mxu1 }
 0x1b9   :  { %v719_v54 = vadd.f32 %v870_v63, %v718_v51  ;;  %v733_v26 = vpop.f32.mrf.mxu3  ;;  %v704_v58 = vadd.f32 %v870_v63, %v703_v6 }
 0x1ba   :  { %v734_v43 = vadd.f32 %v870_v63, %v733_v26 }
 0x1bb   :  { %754 = vst [vmem:[#allocation2 + $0x60] sm:$0xff] %v719_v54 }
 0x1bc   :  { %759 = vst [vmem:[#allocation2 + $0x88] sm:$0xff] %v734_v43 }
 0x1bd   :  { %749 = vst [vmem:[#allocation2 + $0x38] sm:$0xff] %v704_v58  ;;  %v691_v8 = vpop.f32.mrf.mxu0 }
 0x1be   :  { %v692_v35 = vadd.f32 %v870_v63, %v691_v8 }
 0x1c0   :  { %v721_v12 = vpop.f32.mrf.mxu2  ;;  %745 = vst [vmem:[#allocation2 + $0x18] sm:$0xff] %v692_v35  ;;  %v706_v61 = vpop.f32.mrf.mxu1 }
 0x1c1   :  { %v722_v60 = vadd.f32 %v870_v63, %v721_v12  ;;  %v707_v42 = vadd.f32 %v870_v63, %v706_v61  ;;  %v736_v22 = vpop.f32.mrf.mxu3 }
 0x1c2   :  { %v737_v4 = vadd.f32 %v870_v63, %v736_v22 }
 0x1c3   :  { %755 = vst [vmem:[#allocation2 + $0x68] sm:$0xff] %v722_v60 }
 0x1c4   :  { %750 = vst [vmem:[#allocation2 + $0x40] sm:$0xff] %v707_v42 }
 0x1c5   :  { %760 = vst [vmem:[#allocation2 + $0x90] sm:$0xff] %v737_v4  ;;  %v694_v5 = vpop.f32.mrf.mxu0 }
 0x1c6   :  { %v695_v3 = vadd.f32 %v870_v63, %v694_v5 }
 0x1c8   :  { %746 = vst [vmem:[#allocation2 + $0x20] sm:$0xff] %v695_v3 }
 0x1c9   :  { %v724_v14 = vpop.f32.mrf.mxu2  ;;  %v739_v16 = vpop.f32.mrf.mxu3 }
 0x1ca   :  { %v725_v56 = vadd.f32 %v870_v63, %v724_v14  ;;  %v709_v24 = vpop.f32.mrf.mxu1  ;;  %v740_v36 = vadd.f32 %v870_v63, %v739_v16 }
 0x1cb   :  { %v710_v34 = vadd.f32 %v870_v63, %v709_v24 }
 0x1cc   :  { %756 = vst [vmem:[#allocation2 + $0x70] sm:$0xff] %v725_v56 }
 0x1cd   :  { %761 = vst [vmem:[#allocation2 + $0x98] sm:$0xff] %v740_v36 }
 0x1ce   :  { %751 = vst [vmem:[#allocation2 + $0x48] sm:$0xff] %v710_v34 }
 0x1cf   :  { %774 = dma.vmem_to_hbm [thread:$0]  %s767_s16, 2560, %s769_s19, [#allocation3], %s941_s20, %s941_s20, %s942_s21  }
 0x1d0   :  { %937 = dma.done.wait [#allocation3], 2560  }
 0x1d1   :  { %938 = vsyncadd [#allocation3], 4294964736 }
 0x1d2   :  { %779 = vsyncpa [#allocation3], 1 }

</bundles_post_ra>
